<compile_context>
chip_gen: v6e
topology: v6e:2x2x1
jax: 0.10.0
libtpu: 0.0.40
codegen_flags: <defaults>
</compile_context>

<pallas_src>
import functools

import jax
import jax.numpy as jnp
from jax.experimental import pallas as pl
from jax.experimental.pallas import tpu as pltpu


def _round_up(x, m):
    return ((x + m - 1) // m) * m


# ---------------------------------------------------------------------------
# Fused Pallas kernel (all LSTM layers + time loop + linear head)
# ---------------------------------------------------------------------------

def _make_fused_kernel(num_layers, seq_len, batch, hidden, i_pad, out_size):
    """Kernel ref layout:
      x_ref : (T*B, i_pad)  time-major, layer-0 input (feature dim zero-padded)
      w_ref : (R, 4H)       row-packed: [w_ih0 (i_pad) | w_hh0 (H) |
                             w_ih1 (H) | w_hh1 (H) | ... | lin_w (H, padded)]
      b_ref : (L+1, 4H)     per-layer (b_ih+b_hh) rows, last row = padded lin_b
      out_ref : (B, O)
    """
    H, B, T, L = hidden, batch, seq_len, num_layers

    def sigmoid1(v):
        # Single-EUP sigmoid (avoids exp + divide lowering).
        return 0.5 * jnp.tanh(0.5 * v) + 0.5

    def kernel(x_ref, w_ref, b_ref, out_ref):
        xs = x_ref[...]                                   # (T*B, i_pad) f32
        row = 0
        outs = None
        for l in range(L):
            in_rows = i_pad if l == 0 else H
            w_ih = w_ref[row:row + in_rows, :]            # (in_rows, 4H)
            row += in_rows
            w_hh = w_ref[row:row + H, :]                  # (H, 4H)
            row += H
            bias = b_ref[l:l + 1, :]                      # (1, 4H)

            # Hoisted input projection + bias: ONE MXU call for the whole
            # sequence; removed from every step of the serial chain.
            xproj = (jnp.dot(xs, w_ih, preferred_element_type=jnp.float32)
                     + bias)                              # (T*B, 4H)

            h = jnp.zeros((B, H), jnp.float32)
            c = jnp.zeros((B, H), jnp.float32)
            outs = []
            for t in range(T):                            # fully unrolled
                gates = xproj[t * B:(t + 1) * B, :] + jnp.dot(
                    h, w_hh, preferred_element_type=jnp.float32)  # (B, 4H)
                sg = sigmoid1(gates)                      # 1 EUP pass (i,f,o)
                tg = jnp.tanh(gates)                      # 1 EUP pass (g)
                i_g = sg[:, 0:H]
                f_g = sg[:, H:2 * H]
                g_g = tg[:, 2 * H:3 * H]
                o_g = sg[:, 3 * H:4 * H]
                c = f_g * c + i_g * g_g
                h = o_g * jnp.tanh(c)                     # 1 EUP pass
                outs.append(h)
            if l + 1 < L:
                # Stack time-major once so the next layer reuses the hoisted
                # projection fast path.
                xs = jnp.concatenate(outs, axis=0)        # (T*B, H)

        # Final Linear head on the last timestep of the top layer
        # (== out[:, -1, :] in the PyTorch module).
        lin_w = w_ref[row:row + H, 0:out_size]            # (H, O)
        lin_b = b_ref[L:L + 1, 0:out_size]                # (1, O)
        y = jnp.dot(outs[-1], lin_w, preferred_element_type=jnp.float32) + lin_b
        out_ref[...] = y.astype(out_ref.dtype)

    return kernel


# ---------------------------------------------------------------------------
# Host-side packing (wrapper-level reshapes / pads are tiny and free)
# ---------------------------------------------------------------------------

def _pack_inputs(x, params, hidden_size):
    B, T, I = x.shape
    H = hidden_size
    L = len(params["lstm"])
    O = params["linear_w"].shape[1]
    G = 4 * H
    assert H % 8 == 0, "hidden size must be a multiple of 8"
    i_pad = max(8, _round_up(I, 8))

    # Time-major flatten + zero-pad feature dim so all w_ih blocks pack cleanly.
    x_tm = jnp.transpose(x, (1, 0, 2)).reshape(T * B, I).astype(jnp.float32)
    if i_pad > I:
        x_tm = jnp.pad(x_tm, ((0, 0), (0, i_pad - I)))

    blocks, biases = [], []
    for l, layer in enumerate(params["lstm"]):
        w_ih = layer["w_ih"]
        if l == 0 and i_pad > w_ih.shape[0]:
            w_ih = jnp.pad(w_ih, ((0, i_pad - w_ih.shape[0]), (0, 0)))
        blocks.append(w_ih)                               # (i_pad|H, 4H)
        blocks.append(layer["w_hh"])                      # (H, 4H)
        biases.append(layer["bias"])                      # (1, 4H)
    # Linear head packed into the same two arrays (zero-padded to 4H lanes).
    blocks.append(jnp.pad(params["linear_w"], ((0, 0), (0, G - O))))
    biases.append(jnp.pad(params["linear_b"], ((0, 0), (0, G - O))))

    w_all = jnp.concatenate(blocks, axis=0).astype(jnp.float32)
    b_all = jnp.concatenate(biases, axis=0).astype(jnp.float32)
    return x_tm, w_all, b_all, i_pad


# ---------------------------------------------------------------------------
# Wrapper: one pallas_call for the whole forward pass
# ---------------------------------------------------------------------------

def stock_lstm_forward(x, params):
    """x: (B, T, input_size) batch-first, matching the PyTorch module."""
    B, T, _ = x.shape
    H = params["lstm"][0]["w_hh"].shape[0]
    L = len(params["lstm"])
    O = params["linear_w"].shape[1]

    x_tm, w_all, b_all, i_pad = _pack_inputs(x, params, H)

    flops = 2 * T * B * i_pad * 4 * H                 # layer-0 input projection
    flops += 2 * (L - 1) * T * B * H * 4 * H          # higher-layer projections
    flops += 2 * L * T * B * H * 4 * H                # recurrent matmuls
    flops += 2 * B * H * O                            # linear head
    transcendentals = L * T * B * (4 * H + 4 * H + H)  # sigmoid + tanh(g) + tanh(c)
    bytes_accessed = 4 * (x_tm.size + w_all.size + b_all.size + B * O)

    return pl.pallas_call(
        _make_fused_kernel(L, T, B, H, i_pad, O),
        out_shape=jax.ShapeDtypeStruct((B, O), jnp.float32),
        in_specs=[pl.BlockSpec(memory_space=pltpu.MemorySpace.VMEM)] * 3,
        out_specs=pl.BlockSpec(memory_space=pltpu.MemorySpace.VMEM),
        cost_estimate=pl.CostEstimate(
            flops=int(flops),
            transcendentals=int(transcendentals),
            bytes_accessed=int(bytes_accessed)),
        compiler_params=pltpu.CompilerParams(),
    )(x_tm, w_all, b_all)


# ---------------------------------------------------------------------------
# Deterministic parameter initialization (mirrors nn.LSTM / nn.Linear shapes)
# ---------------------------------------------------------------------------

def init_params(key, input_size, hidden_size, output_size, num_layers):
    bound = 1.0 / jnp.sqrt(jnp.float32(hidden_size))
    layers = []
    for l in range(num_layers):
        in_dim = input_size if l == 0 else hidden_size
        key, k1, k2, k3, k4 = jax.random.split(key, 5)
        # PyTorch stores weight_ih as (4H, in_dim); we keep the transpose (in_dim, 4H).
        w_ih = jax.random.uniform(k1, (in_dim, 4 * hidden_size),
                                  minval=-bound, maxval=bound, dtype=jnp.float32)
        w_hh = jax.random.uniform(k2, (hidden_size, 4 * hidden_size),
                                  minval=-bound, maxval=bound, dtype=jnp.float32)
        b_ih = jax.random.uniform(k3, (4 * hidden_size,),
                                  minval=-bound, maxval=bound, dtype=jnp.float32)
        b_hh = jax.random.uniform(k4, (4 * hidden_size,),
                                  minval=-bound, maxval=bound, dtype=jnp.float32)
        layers.append({
            "w_ih": w_ih,
            "w_hh": w_hh,
            "bias": (b_ih + b_hh).reshape(1, 4 * hidden_size),
        })
    key, k5, k6 = jax.random.split(key, 3)
    lin_bound = 1.0 / jnp.sqrt(jnp.float32(hidden_size))
    linear_w = jax.random.uniform(k5, (hidden_size, output_size),
                                  minval=-lin_bound, maxval=lin_bound,
                                  dtype=jnp.float32)
    linear_b = jax.random.uniform(k6, (1, output_size),
                                  minval=-lin_bound, maxval=lin_bound,
                                  dtype=jnp.float32)
    return {"lstm": layers, "linear_w": linear_w, "linear_b": linear_b}


# ---------------------------------------------------------------------------
# Main
# ---------------------------------------------------------------------------

if __name__ == "__main__":
    # Shapes consistent with the module's forward:
    #   x: (batch=4, seq=8, input_size=8), hidden=32, output_size=1, num_layers=2
    B, T, INPUT, HIDDEN, OUTPUT, LAYERS = 4, 8, 8, 32, 1, 2

    key = jax.random.PRNGKey(0)
    key, xk = jax.random.split(key)
    x = jax.random.normal(xk, (B, T, INPUT), dtype=jnp.float32)

    params = init_params(key, INPUT, HIDDEN, OUTPUT, LAYERS)

    fwd = jax.jit(functools.partial(stock_lstm_forward, params=params))
    out = fwd(x)
    jax.block_until_ready(out)

    assert out.shape == (B, OUTPUT), out.shape
    assert bool(jnp.all(jnp.isfinite(out))), "non-finite output"
    print("KERNEL_OK")
</pallas_src>

<mosaic_0001>
module attributes {stable_mosaic.version = 11 : i64} {
  func.func @kernel(%arg0: memref<32x8xf32, #tpu.memory_space<vmem>>, %arg1: memref<136x128xf32, #tpu.memory_space<vmem>>, %arg2: memref<3x128xf32, #tpu.memory_space<vmem>>, %arg3: memref<4x1xf32, #tpu.memory_space<vmem>>) attributes {dimension_semantics = [], scalar_prefetch = 0 : i64, scratch_operands = 0 : i64, tpu.core_type = #tpu.core_type<tc>} {
    %c0 = arith.constant 0 : index
    %c0_0 = arith.constant 0 : index
    %0 = vector.load %arg0[%c0, %c0_0] : memref<32x8xf32, #tpu.memory_space<vmem>>, vector<32x8xf32>
    %c0_1 = arith.constant 0 : index
    %c0_2 = arith.constant 0 : index
    %1 = vector.load %arg1[%c0_1, %c0_2] : memref<136x128xf32, #tpu.memory_space<vmem>>, vector<8x128xf32>
    %c8 = arith.constant 8 : index
    %c0_3 = arith.constant 0 : index
    %2 = vector.load %arg1[%c8, %c0_3] : memref<136x128xf32, #tpu.memory_space<vmem>>, vector<32x128xf32>
    %c0_4 = arith.constant 0 : index
    %c0_5 = arith.constant 0 : index
    %3 = vector.load %arg2[%c0_4, %c0_5] : memref<3x128xf32, #tpu.memory_space<vmem>>, vector<1x128xf32>
    %cst = arith.constant dense<0.000000e+00> : vector<32x128xf32>
    %4 = tpu.matmul %0, %1, %cst {dimension_numbers = #tpu.dot_dimension_numbers<[1], [0], [0], [1], [0, 0, 1, 1], [], []>} : vector<32x8xf32>, vector<8x128xf32>, vector<32x128xf32> -> vector<32x128xf32>
    %5 = vector.broadcast %3 : vector<1x128xf32> to vector<32x128xf32>
    %6 = arith.addf %4, %5 : vector<32x128xf32>
    %cst_6 = arith.constant 0.000000e+00 : f32
    %7 = vector.broadcast %cst_6 : f32 to vector<4x32xf32>
    %cst_7 = arith.constant 0.000000e+00 : f32
    %8 = vector.broadcast %cst_7 : f32 to vector<4x32xf32>
    %9 = vector.extract_strided_slice %6 {offsets = [0, 0], sizes = [4, 128], strides = [1, 1]} : vector<32x128xf32> to vector<4x128xf32>
    %cst_8 = arith.constant dense<0.000000e+00> : vector<4x128xf32>
    %10 = tpu.matmul %7, %2, %cst_8 {dimension_numbers = #tpu.dot_dimension_numbers<[1], [0], [0], [1], [0, 0, 1, 1], [], []>} : vector<4x32xf32>, vector<32x128xf32>, vector<4x128xf32> -> vector<4x128xf32>
    %11 = arith.addf %9, %10 : vector<4x128xf32>
    %cst_9 = arith.constant 5.000000e-01 : f32
    %12 = vector.broadcast %cst_9 : f32 to vector<4x128xf32>
    %13 = arith.mulf %12, %11 : vector<4x128xf32>
    %14 = math.tanh %13 : vector<4x128xf32>
    %cst_10 = arith.constant 5.000000e-01 : f32
    %15 = vector.broadcast %cst_10 : f32 to vector<4x128xf32>
    %16 = arith.mulf %15, %14 : vector<4x128xf32>
    %cst_11 = arith.constant 5.000000e-01 : f32
    %17 = vector.broadcast %cst_11 : f32 to vector<4x128xf32>
    %18 = arith.addf %16, %17 : vector<4x128xf32>
    %19 = math.tanh %11 : vector<4x128xf32>
    %20 = vector.extract_strided_slice %18 {offsets = [0, 0], sizes = [4, 32], strides = [1, 1]} : vector<4x128xf32> to vector<4x32xf32>
    %21 = vector.extract_strided_slice %18 {offsets = [0, 32], sizes = [4, 32], strides = [1, 1]} : vector<4x128xf32> to vector<4x32xf32>
    %22 = vector.extract_strided_slice %19 {offsets = [0, 64], sizes = [4, 32], strides = [1, 1]} : vector<4x128xf32> to vector<4x32xf32>
    %23 = vector.extract_strided_slice %18 {offsets = [0, 96], sizes = [4, 32], strides = [1, 1]} : vector<4x128xf32> to vector<4x32xf32>
    %24 = arith.mulf %21, %8 : vector<4x32xf32>
    %25 = arith.mulf %20, %22 : vector<4x32xf32>
    %26 = arith.addf %24, %25 : vector<4x32xf32>
    %27 = math.tanh %26 : vector<4x32xf32>
    %28 = arith.mulf %23, %27 : vector<4x32xf32>
    %29 = vector.extract_strided_slice %6 {offsets = [4, 0], sizes = [4, 128], strides = [1, 1]} : vector<32x128xf32> to vector<4x128xf32>
    %cst_12 = arith.constant dense<0.000000e+00> : vector<4x128xf32>
    %30 = tpu.matmul %28, %2, %cst_12 {dimension_numbers = #tpu.dot_dimension_numbers<[1], [0], [0], [1], [0, 0, 1, 1], [], []>} : vector<4x32xf32>, vector<32x128xf32>, vector<4x128xf32> -> vector<4x128xf32>
    %31 = arith.addf %29, %30 : vector<4x128xf32>
    %cst_13 = arith.constant 5.000000e-01 : f32
    %32 = vector.broadcast %cst_13 : f32 to vector<4x128xf32>
    %33 = arith.mulf %32, %31 : vector<4x128xf32>
    %34 = math.tanh %33 : vector<4x128xf32>
    %cst_14 = arith.constant 5.000000e-01 : f32
    %35 = vector.broadcast %cst_14 : f32 to vector<4x128xf32>
    %36 = arith.mulf %35, %34 : vector<4x128xf32>
    %cst_15 = arith.constant 5.000000e-01 : f32
    %37 = vector.broadcast %cst_15 : f32 to vector<4x128xf32>
    %38 = arith.addf %36, %37 : vector<4x128xf32>
    %39 = math.tanh %31 : vector<4x128xf32>
    %40 = vector.extract_strided_slice %38 {offsets = [0, 0], sizes = [4, 32], strides = [1, 1]} : vector<4x128xf32> to vector<4x32xf32>
    %41 = vector.extract_strided_slice %38 {offsets = [0, 32], sizes = [4, 32], strides = [1, 1]} : vector<4x128xf32> to vector<4x32xf32>
    %42 = vector.extract_strided_slice %39 {offsets = [0, 64], sizes = [4, 32], strides = [1, 1]} : vector<4x128xf32> to vector<4x32xf32>
    %43 = vector.extract_strided_slice %38 {offsets = [0, 96], sizes = [4, 32], strides = [1, 1]} : vector<4x128xf32> to vector<4x32xf32>
    %44 = arith.mulf %41, %26 : vector<4x32xf32>
    %45 = arith.mulf %40, %42 : vector<4x32xf32>
    %46 = arith.addf %44, %45 : vector<4x32xf32>
    %47 = math.tanh %46 : vector<4x32xf32>
    %48 = arith.mulf %43, %47 : vector<4x32xf32>
    %49 = vector.extract_strided_slice %6 {offsets = [8, 0], sizes = [4, 128], strides = [1, 1]} : vector<32x128xf32> to vector<4x128xf32>
    %cst_16 = arith.constant dense<0.000000e+00> : vector<4x128xf32>
    %50 = tpu.matmul %48, %2, %cst_16 {dimension_numbers = #tpu.dot_dimension_numbers<[1], [0], [0], [1], [0, 0, 1, 1], [], []>} : vector<4x32xf32>, vector<32x128xf32>, vector<4x128xf32> -> vector<4x128xf32>
    %51 = arith.addf %49, %50 : vector<4x128xf32>
    %cst_17 = arith.constant 5.000000e-01 : f32
    %52 = vector.broadcast %cst_17 : f32 to vector<4x128xf32>
    %53 = arith.mulf %52, %51 : vector<4x128xf32>
    %54 = math.tanh %53 : vector<4x128xf32>
    %cst_18 = arith.constant 5.000000e-01 : f32
    %55 = vector.broadcast %cst_18 : f32 to vector<4x128xf32>
    %56 = arith.mulf %55, %54 : vector<4x128xf32>
    %cst_19 = arith.constant 5.000000e-01 : f32
    %57 = vector.broadcast %cst_19 : f32 to vector<4x128xf32>
    %58 = arith.addf %56, %57 : vector<4x128xf32>
    %59 = math.tanh %51 : vector<4x128xf32>
    %60 = vector.extract_strided_slice %58 {offsets = [0, 0], sizes = [4, 32], strides = [1, 1]} : vector<4x128xf32> to vector<4x32xf32>
    %61 = vector.extract_strided_slice %58 {offsets = [0, 32], sizes = [4, 32], strides = [1, 1]} : vector<4x128xf32> to vector<4x32xf32>
    %62 = vector.extract_strided_slice %59 {offsets = [0, 64], sizes = [4, 32], strides = [1, 1]} : vector<4x128xf32> to vector<4x32xf32>
    %63 = vector.extract_strided_slice %58 {offsets = [0, 96], sizes = [4, 32], strides = [1, 1]} : vector<4x128xf32> to vector<4x32xf32>
    %64 = arith.mulf %61, %46 : vector<4x32xf32>
    %65 = arith.mulf %60, %62 : vector<4x32xf32>
    %66 = arith.addf %64, %65 : vector<4x32xf32>
    %67 = math.tanh %66 : vector<4x32xf32>
    %68 = arith.mulf %63, %67 : vector<4x32xf32>
    %69 = vector.extract_strided_slice %6 {offsets = [12, 0], sizes = [4, 128], strides = [1, 1]} : vector<32x128xf32> to vector<4x128xf32>
    %cst_20 = arith.constant dense<0.000000e+00> : vector<4x128xf32>
    %70 = tpu.matmul %68, %2, %cst_20 {dimension_numbers = #tpu.dot_dimension_numbers<[1], [0], [0], [1], [0, 0, 1, 1], [], []>} : vector<4x32xf32>, vector<32x128xf32>, vector<4x128xf32> -> vector<4x128xf32>
    %71 = arith.addf %69, %70 : vector<4x128xf32>
    %cst_21 = arith.constant 5.000000e-01 : f32
    %72 = vector.broadcast %cst_21 : f32 to vector<4x128xf32>
    %73 = arith.mulf %72, %71 : vector<4x128xf32>
    %74 = math.tanh %73 : vector<4x128xf32>
    %cst_22 = arith.constant 5.000000e-01 : f32
    %75 = vector.broadcast %cst_22 : f32 to vector<4x128xf32>
    %76 = arith.mulf %75, %74 : vector<4x128xf32>
    %cst_23 = arith.constant 5.000000e-01 : f32
    %77 = vector.broadcast %cst_23 : f32 to vector<4x128xf32>
    %78 = arith.addf %76, %77 : vector<4x128xf32>
    %79 = math.tanh %71 : vector<4x128xf32>
    %80 = vector.extract_strided_slice %78 {offsets = [0, 0], sizes = [4, 32], strides = [1, 1]} : vector<4x128xf32> to vector<4x32xf32>
    %81 = vector.extract_strided_slice %78 {offsets = [0, 32], sizes = [4, 32], strides = [1, 1]} : vector<4x128xf32> to vector<4x32xf32>
    %82 = vector.extract_strided_slice %79 {offsets = [0, 64], sizes = [4, 32], strides = [1, 1]} : vector<4x128xf32> to vector<4x32xf32>
    %83 = vector.extract_strided_slice %78 {offsets = [0, 96], sizes = [4, 32], strides = [1, 1]} : vector<4x128xf32> to vector<4x32xf32>
    %84 = arith.mulf %81, %66 : vector<4x32xf32>
    %85 = arith.mulf %80, %82 : vector<4x32xf32>
    %86 = arith.addf %84, %85 : vector<4x32xf32>
    %87 = math.tanh %86 : vector<4x32xf32>
    %88 = arith.mulf %83, %87 : vector<4x32xf32>
    %89 = vector.extract_strided_slice %6 {offsets = [16, 0], sizes = [4, 128], strides = [1, 1]} : vector<32x128xf32> to vector<4x128xf32>
    %cst_24 = arith.constant dense<0.000000e+00> : vector<4x128xf32>
    %90 = tpu.matmul %88, %2, %cst_24 {dimension_numbers = #tpu.dot_dimension_numbers<[1], [0], [0], [1], [0, 0, 1, 1], [], []>} : vector<4x32xf32>, vector<32x128xf32>, vector<4x128xf32> -> vector<4x128xf32>
    %91 = arith.addf %89, %90 : vector<4x128xf32>
    %cst_25 = arith.constant 5.000000e-01 : f32
    %92 = vector.broadcast %cst_25 : f32 to vector<4x128xf32>
    %93 = arith.mulf %92, %91 : vector<4x128xf32>
    %94 = math.tanh %93 : vector<4x128xf32>
    %cst_26 = arith.constant 5.000000e-01 : f32
    %95 = vector.broadcast %cst_26 : f32 to vector<4x128xf32>
    %96 = arith.mulf %95, %94 : vector<4x128xf32>
    %cst_27 = arith.constant 5.000000e-01 : f32
    %97 = vector.broadcast %cst_27 : f32 to vector<4x128xf32>
    %98 = arith.addf %96, %97 : vector<4x128xf32>
    %99 = math.tanh %91 : vector<4x128xf32>
    %100 = vector.extract_strided_slice %98 {offsets = [0, 0], sizes = [4, 32], strides = [1, 1]} : vector<4x128xf32> to vector<4x32xf32>
    %101 = vector.extract_strided_slice %98 {offsets = [0, 32], sizes = [4, 32], strides = [1, 1]} : vector<4x128xf32> to vector<4x32xf32>
    %102 = vector.extract_strided_slice %99 {offsets = [0, 64], sizes = [4, 32], strides = [1, 1]} : vector<4x128xf32> to vector<4x32xf32>
    %103 = vector.extract_strided_slice %98 {offsets = [0, 96], sizes = [4, 32], strides = [1, 1]} : vector<4x128xf32> to vector<4x32xf32>
    %104 = arith.mulf %101, %86 : vector<4x32xf32>
    %105 = arith.mulf %100, %102 : vector<4x32xf32>
    %106 = arith.addf %104, %105 : vector<4x32xf32>
    %107 = math.tanh %106 : vector<4x32xf32>
    %108 = arith.mulf %103, %107 : vector<4x32xf32>
    %109 = vector.extract_strided_slice %6 {offsets = [20, 0], sizes = [4, 128], strides = [1, 1]} : vector<32x128xf32> to vector<4x128xf32>
    %cst_28 = arith.constant dense<0.000000e+00> : vector<4x128xf32>
    %110 = tpu.matmul %108, %2, %cst_28 {dimension_numbers = #tpu.dot_dimension_numbers<[1], [0], [0], [1], [0, 0, 1, 1], [], []>} : vector<4x32xf32>, vector<32x128xf32>, vector<4x128xf32> -> vector<4x128xf32>
    %111 = arith.addf %109, %110 : vector<4x128xf32>
    %cst_29 = arith.constant 5.000000e-01 : f32
    %112 = vector.broadcast %cst_29 : f32 to vector<4x128xf32>
    %113 = arith.mulf %112, %111 : vector<4x128xf32>
    %114 = math.tanh %113 : vector<4x128xf32>
    %cst_30 = arith.constant 5.000000e-01 : f32
    %115 = vector.broadcast %cst_30 : f32 to vector<4x128xf32>
    %116 = arith.mulf %115, %114 : vector<4x128xf32>
    %cst_31 = arith.constant 5.000000e-01 : f32
    %117 = vector.broadcast %cst_31 : f32 to vector<4x128xf32>
    %118 = arith.addf %116, %117 : vector<4x128xf32>
    %119 = math.tanh %111 : vector<4x128xf32>
    %120 = vector.extract_strided_slice %118 {offsets = [0, 0], sizes = [4, 32], strides = [1, 1]} : vector<4x128xf32> to vector<4x32xf32>
    %121 = vector.extract_strided_slice %118 {offsets = [0, 32], sizes = [4, 32], strides = [1, 1]} : vector<4x128xf32> to vector<4x32xf32>
    %122 = vector.extract_strided_slice %119 {offsets = [0, 64], sizes = [4, 32], strides = [1, 1]} : vector<4x128xf32> to vector<4x32xf32>
    %123 = vector.extract_strided_slice %118 {offsets = [0, 96], sizes = [4, 32], strides = [1, 1]} : vector<4x128xf32> to vector<4x32xf32>
    %124 = arith.mulf %121, %106 : vector<4x32xf32>
    %125 = arith.mulf %120, %122 : vector<4x32xf32>
    %126 = arith.addf %124, %125 : vector<4x32xf32>
    %127 = math.tanh %126 : vector<4x32xf32>
    %128 = arith.mulf %123, %127 : vector<4x32xf32>
    %129 = vector.extract_strided_slice %6 {offsets = [24, 0], sizes = [4, 128], strides = [1, 1]} : vector<32x128xf32> to vector<4x128xf32>
    %cst_32 = arith.constant dense<0.000000e+00> : vector<4x128xf32>
    %130 = tpu.matmul %128, %2, %cst_32 {dimension_numbers = #tpu.dot_dimension_numbers<[1], [0], [0], [1], [0, 0, 1, 1], [], []>} : vector<4x32xf32>, vector<32x128xf32>, vector<4x128xf32> -> vector<4x128xf32>
    %131 = arith.addf %129, %130 : vector<4x128xf32>
    %cst_33 = arith.constant 5.000000e-01 : f32
    %132 = vector.broadcast %cst_33 : f32 to vector<4x128xf32>
    %133 = arith.mulf %132, %131 : vector<4x128xf32>
    %134 = math.tanh %133 : vector<4x128xf32>
    %cst_34 = arith.constant 5.000000e-01 : f32
    %135 = vector.broadcast %cst_34 : f32 to vector<4x128xf32>
    %136 = arith.mulf %135, %134 : vector<4x128xf32>
    %cst_35 = arith.constant 5.000000e-01 : f32
    %137 = vector.broadcast %cst_35 : f32 to vector<4x128xf32>
    %138 = arith.addf %136, %137 : vector<4x128xf32>
    %139 = math.tanh %131 : vector<4x128xf32>
    %140 = vector.extract_strided_slice %138 {offsets = [0, 0], sizes = [4, 32], strides = [1, 1]} : vector<4x128xf32> to vector<4x32xf32>
    %141 = vector.extract_strided_slice %138 {offsets = [0, 32], sizes = [4, 32], strides = [1, 1]} : vector<4x128xf32> to vector<4x32xf32>
    %142 = vector.extract_strided_slice %139 {offsets = [0, 64], sizes = [4, 32], strides = [1, 1]} : vector<4x128xf32> to vector<4x32xf32>
    %143 = vector.extract_strided_slice %138 {offsets = [0, 96], sizes = [4, 32], strides = [1, 1]} : vector<4x128xf32> to vector<4x32xf32>
    %144 = arith.mulf %141, %126 : vector<4x32xf32>
    %145 = arith.mulf %140, %142 : vector<4x32xf32>
    %146 = arith.addf %144, %145 : vector<4x32xf32>
    %147 = math.tanh %146 : vector<4x32xf32>
    %148 = arith.mulf %143, %147 : vector<4x32xf32>
    %149 = vector.extract_strided_slice %6 {offsets = [28, 0], sizes = [4, 128], strides = [1, 1]} : vector<32x128xf32> to vector<4x128xf32>
    %cst_36 = arith.constant dense<0.000000e+00> : vector<4x128xf32>
    %150 = tpu.matmul %148, %2, %cst_36 {dimension_numbers = #tpu.dot_dimension_numbers<[1], [0], [0], [1], [0, 0, 1, 1], [], []>} : vector<4x32xf32>, vector<32x128xf32>, vector<4x128xf32> -> vector<4x128xf32>
    %151 = arith.addf %149, %150 : vector<4x128xf32>
    %cst_37 = arith.constant 5.000000e-01 : f32
    %152 = vector.broadcast %cst_37 : f32 to vector<4x128xf32>
    %153 = arith.mulf %152, %151 : vector<4x128xf32>
    %154 = math.tanh %153 : vector<4x128xf32>
    %cst_38 = arith.constant 5.000000e-01 : f32
    %155 = vector.broadcast %cst_38 : f32 to vector<4x128xf32>
    %156 = arith.mulf %155, %154 : vector<4x128xf32>
    %cst_39 = arith.constant 5.000000e-01 : f32
    %157 = vector.broadcast %cst_39 : f32 to vector<4x128xf32>
    %158 = arith.addf %156, %157 : vector<4x128xf32>
    %159 = math.tanh %151 : vector<4x128xf32>
    %160 = vector.extract_strided_slice %158 {offsets = [0, 0], sizes = [4, 32], strides = [1, 1]} : vector<4x128xf32> to vector<4x32xf32>
    %161 = vector.extract_strided_slice %158 {offsets = [0, 32], sizes = [4, 32], strides = [1, 1]} : vector<4x128xf32> to vector<4x32xf32>
    %162 = vector.extract_strided_slice %159 {offsets = [0, 64], sizes = [4, 32], strides = [1, 1]} : vector<4x128xf32> to vector<4x32xf32>
    %163 = vector.extract_strided_slice %158 {offsets = [0, 96], sizes = [4, 32], strides = [1, 1]} : vector<4x128xf32> to vector<4x32xf32>
    %164 = arith.mulf %161, %146 : vector<4x32xf32>
    %165 = arith.mulf %160, %162 : vector<4x32xf32>
    %166 = arith.addf %164, %165 : vector<4x32xf32>
    %167 = math.tanh %166 : vector<4x32xf32>
    %168 = arith.mulf %163, %167 : vector<4x32xf32>
    %169 = tpu.concatenate %28, %48, %68, %88, %108, %128, %148, %168 in 0 : vector<4x32xf32>, vector<4x32xf32>, vector<4x32xf32>, vector<4x32xf32>, vector<4x32xf32>, vector<4x32xf32>, vector<4x32xf32>, vector<4x32xf32> -> vector<32x32xf32>
    %c40 = arith.constant 40 : index
    %c0_40 = arith.constant 0 : index
    %170 = vector.load %arg1[%c40, %c0_40] : memref<136x128xf32, #tpu.memory_space<vmem>>, vector<32x128xf32>
    %c72 = arith.constant 72 : index
    %c0_41 = arith.constant 0 : index
    %171 = vector.load %arg1[%c72, %c0_41] : memref<136x128xf32, #tpu.memory_space<vmem>>, vector<32x128xf32>
    %c1 = arith.constant 1 : index
    %c0_42 = arith.constant 0 : index
    %172 = vector.load %arg2[%c1, %c0_42] : memref<3x128xf32, #tpu.memory_space<vmem>>, vector<1x128xf32>
    %cst_43 = arith.constant dense<0.000000e+00> : vector<32x128xf32>
    %173 = tpu.matmul %169, %170, %cst_43 {dimension_numbers = #tpu.dot_dimension_numbers<[1], [0], [0], [1], [0, 0, 1, 1], [], []>} : vector<32x32xf32>, vector<32x128xf32>, vector<32x128xf32> -> vector<32x128xf32>
    %174 = vector.broadcast %172 : vector<1x128xf32> to vector<32x128xf32>
    %175 = arith.addf %173, %174 : vector<32x128xf32>
    %cst_44 = arith.constant 0.000000e+00 : f32
    %176 = vector.broadcast %cst_44 : f32 to vector<4x32xf32>
    %cst_45 = arith.constant 0.000000e+00 : f32
    %177 = vector.broadcast %cst_45 : f32 to vector<4x32xf32>
    %178 = vector.extract_strided_slice %175 {offsets = [0, 0], sizes = [4, 128], strides = [1, 1]} : vector<32x128xf32> to vector<4x128xf32>
    %cst_46 = arith.constant dense<0.000000e+00> : vector<4x128xf32>
    %179 = tpu.matmul %176, %171, %cst_46 {dimension_numbers = #tpu.dot_dimension_numbers<[1], [0], [0], [1], [0, 0, 1, 1], [], []>} : vector<4x32xf32>, vector<32x128xf32>, vector<4x128xf32> -> vector<4x128xf32>
    %180 = arith.addf %178, %179 : vector<4x128xf32>
    %cst_47 = arith.constant 5.000000e-01 : f32
    %181 = vector.broadcast %cst_47 : f32 to vector<4x128xf32>
    %182 = arith.mulf %181, %180 : vector<4x128xf32>
    %183 = math.tanh %182 : vector<4x128xf32>
    %cst_48 = arith.constant 5.000000e-01 : f32
    %184 = vector.broadcast %cst_48 : f32 to vector<4x128xf32>
    %185 = arith.mulf %184, %183 : vector<4x128xf32>
    %cst_49 = arith.constant 5.000000e-01 : f32
    %186 = vector.broadcast %cst_49 : f32 to vector<4x128xf32>
    %187 = arith.addf %185, %186 : vector<4x128xf32>
    %188 = math.tanh %180 : vector<4x128xf32>
    %189 = vector.extract_strided_slice %187 {offsets = [0, 0], sizes = [4, 32], strides = [1, 1]} : vector<4x128xf32> to vector<4x32xf32>
    %190 = vector.extract_strided_slice %187 {offsets = [0, 32], sizes = [4, 32], strides = [1, 1]} : vector<4x128xf32> to vector<4x32xf32>
    %191 = vector.extract_strided_slice %188 {offsets = [0, 64], sizes = [4, 32], strides = [1, 1]} : vector<4x128xf32> to vector<4x32xf32>
    %192 = vector.extract_strided_slice %187 {offsets = [0, 96], sizes = [4, 32], strides = [1, 1]} : vector<4x128xf32> to vector<4x32xf32>
    %193 = arith.mulf %190, %177 : vector<4x32xf32>
    %194 = arith.mulf %189, %191 : vector<4x32xf32>
    %195 = arith.addf %193, %194 : vector<4x32xf32>
    %196 = math.tanh %195 : vector<4x32xf32>
    %197 = arith.mulf %192, %196 : vector<4x32xf32>
    %198 = vector.extract_strided_slice %175 {offsets = [4, 0], sizes = [4, 128], strides = [1, 1]} : vector<32x128xf32> to vector<4x128xf32>
    %cst_50 = arith.constant dense<0.000000e+00> : vector<4x128xf32>
    %199 = tpu.matmul %197, %171, %cst_50 {dimension_numbers = #tpu.dot_dimension_numbers<[1], [0], [0], [1], [0, 0, 1, 1], [], []>} : vector<4x32xf32>, vector<32x128xf32>, vector<4x128xf32> -> vector<4x128xf32>
    %200 = arith.addf %198, %199 : vector<4x128xf32>
    %cst_51 = arith.constant 5.000000e-01 : f32
    %201 = vector.broadcast %cst_51 : f32 to vector<4x128xf32>
    %202 = arith.mulf %201, %200 : vector<4x128xf32>
    %203 = math.tanh %202 : vector<4x128xf32>
    %cst_52 = arith.constant 5.000000e-01 : f32
    %204 = vector.broadcast %cst_52 : f32 to vector<4x128xf32>
    %205 = arith.mulf %204, %203 : vector<4x128xf32>
    %cst_53 = arith.constant 5.000000e-01 : f32
    %206 = vector.broadcast %cst_53 : f32 to vector<4x128xf32>
    %207 = arith.addf %205, %206 : vector<4x128xf32>
    %208 = math.tanh %200 : vector<4x128xf32>
    %209 = vector.extract_strided_slice %207 {offsets = [0, 0], sizes = [4, 32], strides = [1, 1]} : vector<4x128xf32> to vector<4x32xf32>
    %210 = vector.extract_strided_slice %207 {offsets = [0, 32], sizes = [4, 32], strides = [1, 1]} : vector<4x128xf32> to vector<4x32xf32>
    %211 = vector.extract_strided_slice %208 {offsets = [0, 64], sizes = [4, 32], strides = [1, 1]} : vector<4x128xf32> to vector<4x32xf32>
    %212 = vector.extract_strided_slice %207 {offsets = [0, 96], sizes = [4, 32], strides = [1, 1]} : vector<4x128xf32> to vector<4x32xf32>
    %213 = arith.mulf %210, %195 : vector<4x32xf32>
    %214 = arith.mulf %209, %211 : vector<4x32xf32>
    %215 = arith.addf %213, %214 : vector<4x32xf32>
    %216 = math.tanh %215 : vector<4x32xf32>
    %217 = arith.mulf %212, %216 : vector<4x32xf32>
    %218 = vector.extract_strided_slice %175 {offsets = [8, 0], sizes = [4, 128], strides = [1, 1]} : vector<32x128xf32> to vector<4x128xf32>
    %cst_54 = arith.constant dense<0.000000e+00> : vector<4x128xf32>
    %219 = tpu.matmul %217, %171, %cst_54 {dimension_numbers = #tpu.dot_dimension_numbers<[1], [0], [0], [1], [0, 0, 1, 1], [], []>} : vector<4x32xf32>, vector<32x128xf32>, vector<4x128xf32> -> vector<4x128xf32>
    %220 = arith.addf %218, %219 : vector<4x128xf32>
    %cst_55 = arith.constant 5.000000e-01 : f32
    %221 = vector.broadcast %cst_55 : f32 to vector<4x128xf32>
    %222 = arith.mulf %221, %220 : vector<4x128xf32>
    %223 = math.tanh %222 : vector<4x128xf32>
    %cst_56 = arith.constant 5.000000e-01 : f32
    %224 = vector.broadcast %cst_56 : f32 to vector<4x128xf32>
    %225 = arith.mulf %224, %223 : vector<4x128xf32>
    %cst_57 = arith.constant 5.000000e-01 : f32
    %226 = vector.broadcast %cst_57 : f32 to vector<4x128xf32>
    %227 = arith.addf %225, %226 : vector<4x128xf32>
    %228 = math.tanh %220 : vector<4x128xf32>
    %229 = vector.extract_strided_slice %227 {offsets = [0, 0], sizes = [4, 32], strides = [1, 1]} : vector<4x128xf32> to vector<4x32xf32>
    %230 = vector.extract_strided_slice %227 {offsets = [0, 32], sizes = [4, 32], strides = [1, 1]} : vector<4x128xf32> to vector<4x32xf32>
    %231 = vector.extract_strided_slice %228 {offsets = [0, 64], sizes = [4, 32], strides = [1, 1]} : vector<4x128xf32> to vector<4x32xf32>
    %232 = vector.extract_strided_slice %227 {offsets = [0, 96], sizes = [4, 32], strides = [1, 1]} : vector<4x128xf32> to vector<4x32xf32>
    %233 = arith.mulf %230, %215 : vector<4x32xf32>
    %234 = arith.mulf %229, %231 : vector<4x32xf32>
    %235 = arith.addf %233, %234 : vector<4x32xf32>
    %236 = math.tanh %235 : vector<4x32xf32>
    %237 = arith.mulf %232, %236 : vector<4x32xf32>
    %238 = vector.extract_strided_slice %175 {offsets = [12, 0], sizes = [4, 128], strides = [1, 1]} : vector<32x128xf32> to vector<4x128xf32>
    %cst_58 = arith.constant dense<0.000000e+00> : vector<4x128xf32>
    %239 = tpu.matmul %237, %171, %cst_58 {dimension_numbers = #tpu.dot_dimension_numbers<[1], [0], [0], [1], [0, 0, 1, 1], [], []>} : vector<4x32xf32>, vector<32x128xf32>, vector<4x128xf32> -> vector<4x128xf32>
    %240 = arith.addf %238, %239 : vector<4x128xf32>
    %cst_59 = arith.constant 5.000000e-01 : f32
    %241 = vector.broadcast %cst_59 : f32 to vector<4x128xf32>
    %242 = arith.mulf %241, %240 : vector<4x128xf32>
    %243 = math.tanh %242 : vector<4x128xf32>
    %cst_60 = arith.constant 5.000000e-01 : f32
    %244 = vector.broadcast %cst_60 : f32 to vector<4x128xf32>
    %245 = arith.mulf %244, %243 : vector<4x128xf32>
    %cst_61 = arith.constant 5.000000e-01 : f32
    %246 = vector.broadcast %cst_61 : f32 to vector<4x128xf32>
    %247 = arith.addf %245, %246 : vector<4x128xf32>
    %248 = math.tanh %240 : vector<4x128xf32>
    %249 = vector.extract_strided_slice %247 {offsets = [0, 0], sizes = [4, 32], strides = [1, 1]} : vector<4x128xf32> to vector<4x32xf32>
    %250 = vector.extract_strided_slice %247 {offsets = [0, 32], sizes = [4, 32], strides = [1, 1]} : vector<4x128xf32> to vector<4x32xf32>
    %251 = vector.extract_strided_slice %248 {offsets = [0, 64], sizes = [4, 32], strides = [1, 1]} : vector<4x128xf32> to vector<4x32xf32>
    %252 = vector.extract_strided_slice %247 {offsets = [0, 96], sizes = [4, 32], strides = [1, 1]} : vector<4x128xf32> to vector<4x32xf32>
    %253 = arith.mulf %250, %235 : vector<4x32xf32>
    %254 = arith.mulf %249, %251 : vector<4x32xf32>
    %255 = arith.addf %253, %254 : vector<4x32xf32>
    %256 = math.tanh %255 : vector<4x32xf32>
    %257 = arith.mulf %252, %256 : vector<4x32xf32>
    %258 = vector.extract_strided_slice %175 {offsets = [16, 0], sizes = [4, 128], strides = [1, 1]} : vector<32x128xf32> to vector<4x128xf32>
    %cst_62 = arith.constant dense<0.000000e+00> : vector<4x128xf32>
    %259 = tpu.matmul %257, %171, %cst_62 {dimension_numbers = #tpu.dot_dimension_numbers<[1], [0], [0], [1], [0, 0, 1, 1], [], []>} : vector<4x32xf32>, vector<32x128xf32>, vector<4x128xf32> -> vector<4x128xf32>
    %260 = arith.addf %258, %259 : vector<4x128xf32>
    %cst_63 = arith.constant 5.000000e-01 : f32
    %261 = vector.broadcast %cst_63 : f32 to vector<4x128xf32>
    %262 = arith.mulf %261, %260 : vector<4x128xf32>
    %263 = math.tanh %262 : vector<4x128xf32>
    %cst_64 = arith.constant 5.000000e-01 : f32
    %264 = vector.broadcast %cst_64 : f32 to vector<4x128xf32>
    %265 = arith.mulf %264, %263 : vector<4x128xf32>
    %cst_65 = arith.constant 5.000000e-01 : f32
    %266 = vector.broadcast %cst_65 : f32 to vector<4x128xf32>
    %267 = arith.addf %265, %266 : vector<4x128xf32>
    %268 = math.tanh %260 : vector<4x128xf32>
    %269 = vector.extract_strided_slice %267 {offsets = [0, 0], sizes = [4, 32], strides = [1, 1]} : vector<4x128xf32> to vector<4x32xf32>
    %270 = vector.extract_strided_slice %267 {offsets = [0, 32], sizes = [4, 32], strides = [1, 1]} : vector<4x128xf32> to vector<4x32xf32>
    %271 = vector.extract_strided_slice %268 {offsets = [0, 64], sizes = [4, 32], strides = [1, 1]} : vector<4x128xf32> to vector<4x32xf32>
    %272 = vector.extract_strided_slice %267 {offsets = [0, 96], sizes = [4, 32], strides = [1, 1]} : vector<4x128xf32> to vector<4x32xf32>
    %273 = arith.mulf %270, %255 : vector<4x32xf32>
    %274 = arith.mulf %269, %271 : vector<4x32xf32>
    %275 = arith.addf %273, %274 : vector<4x32xf32>
    %276 = math.tanh %275 : vector<4x32xf32>
    %277 = arith.mulf %272, %276 : vector<4x32xf32>
    %278 = vector.extract_strided_slice %175 {offsets = [20, 0], sizes = [4, 128], strides = [1, 1]} : vector<32x128xf32> to vector<4x128xf32>
    %cst_66 = arith.constant dense<0.000000e+00> : vector<4x128xf32>
    %279 = tpu.matmul %277, %171, %cst_66 {dimension_numbers = #tpu.dot_dimension_numbers<[1], [0], [0], [1], [0, 0, 1, 1], [], []>} : vector<4x32xf32>, vector<32x128xf32>, vector<4x128xf32> -> vector<4x128xf32>
    %280 = arith.addf %278, %279 : vector<4x128xf32>
    %cst_67 = arith.constant 5.000000e-01 : f32
    %281 = vector.broadcast %cst_67 : f32 to vector<4x128xf32>
    %282 = arith.mulf %281, %280 : vector<4x128xf32>
    %283 = math.tanh %282 : vector<4x128xf32>
    %cst_68 = arith.constant 5.000000e-01 : f32
    %284 = vector.broadcast %cst_68 : f32 to vector<4x128xf32>
    %285 = arith.mulf %284, %283 : vector<4x128xf32>
    %cst_69 = arith.constant 5.000000e-01 : f32
    %286 = vector.broadcast %cst_69 : f32 to vector<4x128xf32>
    %287 = arith.addf %285, %286 : vector<4x128xf32>
    %288 = math.tanh %280 : vector<4x128xf32>
    %289 = vector.extract_strided_slice %287 {offsets = [0, 0], sizes = [4, 32], strides = [1, 1]} : vector<4x128xf32> to vector<4x32xf32>
    %290 = vector.extract_strided_slice %287 {offsets = [0, 32], sizes = [4, 32], strides = [1, 1]} : vector<4x128xf32> to vector<4x32xf32>
    %291 = vector.extract_strided_slice %288 {offsets = [0, 64], sizes = [4, 32], strides = [1, 1]} : vector<4x128xf32> to vector<4x32xf32>
    %292 = vector.extract_strided_slice %287 {offsets = [0, 96], sizes = [4, 32], strides = [1, 1]} : vector<4x128xf32> to vector<4x32xf32>
    %293 = arith.mulf %290, %275 : vector<4x32xf32>
    %294 = arith.mulf %289, %291 : vector<4x32xf32>
    %295 = arith.addf %293, %294 : vector<4x32xf32>
    %296 = math.tanh %295 : vector<4x32xf32>
    %297 = arith.mulf %292, %296 : vector<4x32xf32>
    %298 = vector.extract_strided_slice %175 {offsets = [24, 0], sizes = [4, 128], strides = [1, 1]} : vector<32x128xf32> to vector<4x128xf32>
    %cst_70 = arith.constant dense<0.000000e+00> : vector<4x128xf32>
    %299 = tpu.matmul %297, %171, %cst_70 {dimension_numbers = #tpu.dot_dimension_numbers<[1], [0], [0], [1], [0, 0, 1, 1], [], []>} : vector<4x32xf32>, vector<32x128xf32>, vector<4x128xf32> -> vector<4x128xf32>
    %300 = arith.addf %298, %299 : vector<4x128xf32>
    %cst_71 = arith.constant 5.000000e-01 : f32
    %301 = vector.broadcast %cst_71 : f32 to vector<4x128xf32>
    %302 = arith.mulf %301, %300 : vector<4x128xf32>
    %303 = math.tanh %302 : vector<4x128xf32>
    %cst_72 = arith.constant 5.000000e-01 : f32
    %304 = vector.broadcast %cst_72 : f32 to vector<4x128xf32>
    %305 = arith.mulf %304, %303 : vector<4x128xf32>
    %cst_73 = arith.constant 5.000000e-01 : f32
    %306 = vector.broadcast %cst_73 : f32 to vector<4x128xf32>
    %307 = arith.addf %305, %306 : vector<4x128xf32>
    %308 = math.tanh %300 : vector<4x128xf32>
    %309 = vector.extract_strided_slice %307 {offsets = [0, 0], sizes = [4, 32], strides = [1, 1]} : vector<4x128xf32> to vector<4x32xf32>
    %310 = vector.extract_strided_slice %307 {offsets = [0, 32], sizes = [4, 32], strides = [1, 1]} : vector<4x128xf32> to vector<4x32xf32>
    %311 = vector.extract_strided_slice %308 {offsets = [0, 64], sizes = [4, 32], strides = [1, 1]} : vector<4x128xf32> to vector<4x32xf32>
    %312 = vector.extract_strided_slice %307 {offsets = [0, 96], sizes = [4, 32], strides = [1, 1]} : vector<4x128xf32> to vector<4x32xf32>
    %313 = arith.mulf %310, %295 : vector<4x32xf32>
    %314 = arith.mulf %309, %311 : vector<4x32xf32>
    %315 = arith.addf %313, %314 : vector<4x32xf32>
    %316 = math.tanh %315 : vector<4x32xf32>
    %317 = arith.mulf %312, %316 : vector<4x32xf32>
    %318 = vector.extract_strided_slice %175 {offsets = [28, 0], sizes = [4, 128], strides = [1, 1]} : vector<32x128xf32> to vector<4x128xf32>
    %cst_74 = arith.constant dense<0.000000e+00> : vector<4x128xf32>
    %319 = tpu.matmul %317, %171, %cst_74 {dimension_numbers = #tpu.dot_dimension_numbers<[1], [0], [0], [1], [0, 0, 1, 1], [], []>} : vector<4x32xf32>, vector<32x128xf32>, vector<4x128xf32> -> vector<4x128xf32>
    %320 = arith.addf %318, %319 : vector<4x128xf32>
    %cst_75 = arith.constant 5.000000e-01 : f32
    %321 = vector.broadcast %cst_75 : f32 to vector<4x128xf32>
    %322 = arith.mulf %321, %320 : vector<4x128xf32>
    %323 = math.tanh %322 : vector<4x128xf32>
    %cst_76 = arith.constant 5.000000e-01 : f32
    %324 = vector.broadcast %cst_76 : f32 to vector<4x128xf32>
    %325 = arith.mulf %324, %323 : vector<4x128xf32>
    %cst_77 = arith.constant 5.000000e-01 : f32
    %326 = vector.broadcast %cst_77 : f32 to vector<4x128xf32>
    %327 = arith.addf %325, %326 : vector<4x128xf32>
    %328 = math.tanh %320 : vector<4x128xf32>
    %329 = vector.extract_strided_slice %327 {offsets = [0, 0], sizes = [4, 32], strides = [1, 1]} : vector<4x128xf32> to vector<4x32xf32>
    %330 = vector.extract_strided_slice %327 {offsets = [0, 32], sizes = [4, 32], strides = [1, 1]} : vector<4x128xf32> to vector<4x32xf32>
    %331 = vector.extract_strided_slice %328 {offsets = [0, 64], sizes = [4, 32], strides = [1, 1]} : vector<4x128xf32> to vector<4x32xf32>
    %332 = vector.extract_strided_slice %327 {offsets = [0, 96], sizes = [4, 32], strides = [1, 1]} : vector<4x128xf32> to vector<4x32xf32>
    %333 = arith.mulf %330, %315 : vector<4x32xf32>
    %334 = arith.mulf %329, %331 : vector<4x32xf32>
    %335 = arith.addf %333, %334 : vector<4x32xf32>
    %336 = math.tanh %335 : vector<4x32xf32>
    %337 = arith.mulf %332, %336 : vector<4x32xf32>
    %c104 = arith.constant 104 : index
    %c0_78 = arith.constant 0 : index
    %338 = vector.load %arg1[%c104, %c0_78] : memref<136x128xf32, #tpu.memory_space<vmem>>, vector<32x1xf32>
    %c2 = arith.constant 2 : index
    %c0_79 = arith.constant 0 : index
    %339 = vector.load %arg2[%c2, %c0_79] : memref<3x128xf32, #tpu.memory_space<vmem>>, vector<1x1xf32>
    %cst_80 = arith.constant dense<0.000000e+00> : vector<4x1xf32>
    %340 = tpu.matmul %337, %338, %cst_80 {dimension_numbers = #tpu.dot_dimension_numbers<[1], [0], [0], [1], [0, 0, 1, 1], [], []>} : vector<4x32xf32>, vector<32x1xf32>, vector<4x1xf32> -> vector<4x1xf32>
    %341 = vector.broadcast %339 : vector<1x1xf32> to vector<4x1xf32>
    %342 = arith.addf %340, %341 : vector<4x1xf32>
    %c0_81 = arith.constant 0 : index
    %c0_82 = arith.constant 0 : index
    %343 = vector.load %arg3[%c0_81, %c0_82] : memref<4x1xf32, #tpu.memory_space<vmem>>, vector<4x1xf32>
    tpu.vector_store %arg3[%c0_81, %c0_82], %342 {strides = array<i32>} : memref<4x1xf32, #tpu.memory_space<vmem>>, vector<4x1xf32>,
    return
  }
}

</mosaic_0001>

<bundles_post_ra>
// kernel: stock_lstm_forward.1
= control target key start
LH: loop header
LB: loop body
LE: loop exit
PB: predicated region body
PF: predicated region fallthrough
CT: control target
= control target key end

     0   :  { %8 = vsyncpa [#allocation3], 0  ;;  %s2447_s12 = smov [#allocation2]   ;;  %s2849_s0 = inlined_call_operand.vmem [shape: f32[32,8], index: 0, kind: input, shape index: {}]   ;;  %s2850_s1 = inlined_call_operand.hbm [shape: f32[136,128], index: 1, kind: input, shape index: {}]   ;;  %s2851_s2 = inlined_call_operand.vmem [shape: f32[3,128], index: 2, kind: input, shape index: {}]   ;;  %s2852_s3 = inlined_call_operand.vmem [shape: f32[4,1], index: 3, kind: output, shape index: {}]  }
   0x1   :  { %s16_s13 = sshll.u32 %s2447_s12, 4  ;;  %s17_s13 = int_to_ptr.vmem [resolvable:$true] %s16_s13 }
   0x2   :  { %s2433_s14 = scalar_lea.vmem %s17_s13, 2176  ;;  %p2438_p1 = scmp.lt.s32.totalorder %s17_s13, %s17_s13 }
   0x3   :  { %p2434_p0 = scmp.ne.s32.totalorder %s17_s13, %s2433_s14  ;;  %p2439_p2 = scmp.lt.s32.totalorder %s2433_s14, %s2433_s14 }
   0x5   :  { %p2440_p3 = por %p2439_p2, %p2438_p1 }
   0x7   :  { %p2441_p4 = pnand %p2440_p3, %p2434_p0 }
   0x9   :  { %2444 = shalt.err (!%p2441_p4)
}
   0xa   :  { %s2448_s15 = smov 128   ;;  %s2449_s16 = smov 8  }
   0xb   :  { %22 = dma.hbm_to_vmem [thread:$0]  %s2850_s1, 2176, %s17_s13, [#allocation3], %s2448_s15, %s2448_s15, %s2449_s16  }
   0xc   :  { %2445 = dma.done.wait [#allocation3], 2176  }
   0xd   :  { %2446 = vsyncadd [#allocation3], 4294965120  ;;  %v2450_v0 = vmov 0.0   ;;  %vm2451_vm0 = vmmov 0   ;;  %vm42_vm1 = vcmask 64512   ;;  %v32_v1 = vld [vmem:[#allocation2] sm:$0xff] }
   0xe   :  { %2121 = vmatprep.subr.mxu1 %v2450_v0  ;;  %2129 = vmatprep.mubr.msk.f32.mxu1 %vm2451_vm0, %v2450_v0  ;;  %v2480_v2 = vld [vmem:[#allocation2 + $0x20] sm:$0xff]  ;;  %v29_v4 = vld [vmem:[%s2849_s0 + $0x8] sm:$0xff]  ;;  %v2489_v5 = vld [vmem:[#allocation2 + $0x18] sm:$0xff]  ;;  %s2452_s24 = smov 64   ;;  %s2453_s25 = smov 32   ;;  %vm140_vm2 = vcmask 261120  }
   0xf   :  { %v28_v3 = vld [vmem:[%s2849_s0] sm:$0xff]  ;;  %2113 = vmatprep.subr.mxu0 %v32_v1  ;;  %2122 = vmatpush3.msra.mxu1 %v2480_v2  ;;  %v2494_v6 = vld [vmem:[#allocation2 + $0x10] sm:$0xff]  ;;  %v2499_v7 = vld [vmem:[#allocation2 + $0x8] sm:$0xff]  ;;  %vm959_vm3 = vcmask 1043456   ;;  %vm1982_vm4 = vcmask 3072  }
  0x10   :  { %2114 = vmatpush3.msra.mxu0 %v32_v1  ;;  %2115 = vmatprep.mubr.msk.f32.mxu0 %vm42_vm1, %v28_v3  ;;  %v2529_v9 = vld [vmem:[%s2851_s2] ss:$0 sm:$0xff]  ;;  %v30_v25 = vld [vmem:[%s2849_s0 + $0x10] sm:$0xff]  ;;  %v31_v26 = vld [vmem:[%s2849_s0 + $0x18] sm:$0xff] }
  0x11   :  { %2123 = vmatprep.subr.mxu1 %v2450_v0  ;;  %2116 = vmatmul.mubr.msk.f32.vlgmr.msra.gmra.mxu0 %vm42_vm1, %v29_v4 }
  0x12   :  { %2124 = vmatpush3.msra.mxu1 %v2489_v5  ;;  %2132 = vmatprep.subr.mxu0 %v2450_v0 }
  0x13   :  { %2125 = vmatprep.subr.mxu1 %v2450_v0  ;;  %2133 = vmatpush3.msra.mxu0 %v2480_v2 }
  0x14   :  { %2126 = vmatpush3.msra.mxu1 %v2494_v6  ;;  %2134 = vmatprep.subr.mxu0 %v2450_v0 }
  0x15   :  { %2127 = vmatprep.subr.mxu1 %v2450_v0  ;;  %2135 = vmatpush3.msra.mxu0 %v2489_v5 }
  0x16   :  { %2128 = vmatpush3.msra.mxu1 %v2499_v7  ;;  %2136 = vmatprep.subr.mxu0 %v2450_v0 }
  0x17   :  { %2130 = vmatmul.mubr.f32.vlgmr.msra.gmra.mxu1 %v2450_v0  ;;  %2137 = vmatpush3.msra.mxu0 %v2494_v6 }
  0x18   :  { %2138 = vmatprep.subr.mxu0 %v2450_v0  ;;  %2143 = vmatprep.subr.mxu1 %v2450_v0 }
  0x19   :  { %2139 = vmatpush3.msra.mxu0 %v2499_v7  ;;  %2144 = vmatpush3.msra.mxu1 %v2480_v2 }
  0x1a   :  { %2145 = vmatprep.subr.mxu1 %v2450_v0  ;;  %2151 = vmatprep.mubr.msk.f32.mxu1 %vm2451_vm0, %v2450_v0 }
  0x1b   :  { %2146 = vmatpush3.msra.mxu1 %v2489_v5  ;;  %2154 = vmatprep.subr.mxu0 %v2450_v0 }
  0x1c   :  { %2147 = vmatprep.subr.mxu1 %v2450_v0  ;;  %2118 = vmatprep.mubr.msk.f32.mxu0 %vm42_vm1, %v30_v25 }
  0x1d   :  { %2148 = vmatpush3.msra.mxu1 %v2494_v6  ;;  %2119 = vmatmul.mubr.msk.f32.gmra.mxu0 %vm42_vm1, %v31_v26 }
  0x1e   :  { %2149 = vmatprep.subr.mxu1 %v2450_v0  ;;  %2140 = vmatprep.mubr.msk.f32.mxu0 %vm2451_vm0, %v2450_v0 }
  0x1f   :  { %2150 = vmatpush3.msra.mxu1 %v2499_v7 }
  0x20   :  { %2165 = vmatprep.subr.mxu1 %v2450_v0 }
  0xd1   :  { %v2524_v8 = vpop.f32.mrf.mxu0 }
  0xd2   :  { %v127_v53 = vadd.f32 %v2524_v8, %v2529_v9 }
  0xd3   :  { %v121_v10 = vpop.f32.mrf.mxu0 }
  0xd4   :  { %v122_v11 = vadd.f32 %v2529_v9, %v121_v10 }
  0xd7   :  { %v210_v12 = vpop.f32.mrf.mxu1 }
  0xd8   :  { %v214_v13 = vadd.f32 %v210_v12, %v122_v11 }
  0xd9   :  { %v2131_v14 = vpop.f32.mrf.mxu1 }
  0xda   :  { %2329 = vtanh.f32 %v214_v13  ;;  %v215_v16 = vmul.f32 0.5, %v214_v13 }
  0xdc   :  { %2331 = vtanh.f32 %v215_v16 }
  0xdd   :  { %v2560_v31 = vpop.f32.mrf.mxu0 }
  0xdf   :  { %v2562_v32 = vpop.f32.mrf.mxu0 }
  0xe7   :  { %v2330_v15 = vpop.eup %2329 }
  0xe8   :  { %222 = vrot.lane.b32.xlu0 %v2330_v15, %s2452_s24 }
  0xe9   :  { %v2332_v17 = vpop.eup %2331 }
  0xea   :  { %v217_v18 = vmul.f32 0.5, %v2332_v17 }
  0xec   :  { %v218_v19 = vadd.f32 0.5, %v217_v18 }
  0xee   :  { %v220_v22 = vmul.f32 0.0, %v218_v19 }
 0x15a   :  { %v223_v20 = vpop.permute.xlu0 %222 }
 0x15b   :  { %v225_v21 = vmul.f32 %v223_v20, %v218_v19 }
 0x15d   :  { %227 = vrot.lane.b32.xlu0 %v225_v21, %s2453_s25 }
 0x1cf   :  { %v228_v23 = vpop.permute.xlu0 %227 }
 0x1d0   :  { %v230_v24 = vadd.f32 %v228_v23, %v220_v22 }
 0x1d2   :  { %2333 = vtanh.f32 %v230_v24  ;;  %v322_v44 = vrot.slane %v230_v24, 4 }
 0x1df   :  { %v2334_v27 = vpop.eup %2333 }
 0x1e0   :  { %233 = vrot.lane.b32.xlu1 %v2334_v27, %s2452_s24 }
 0x252   :  { %v234_v28 = vpop.permute.xlu1 %233 }
 0x253   :  { %v2545_v29 = vmul.f32 %v234_v28, %v218_v19 }
 0x255   :  { %238 = vrot.lane.b32.xlu1 %v2545_v29, %s2453_s25 }
 0x2c7   :  { %v239_v30 = vpop.permute.xlu1 %238 }
 0x2c8   :  { %2141 = vmatmul.mubr.msk.f32.vlgmr.msra.gmra.mxu0 %vm140_vm2, %v239_v30 }
 0x2c9   :  { %2155 = vmatpush3.msra.mxu0 %v2480_v2  ;;  %2162 = vmatprep.mubr.msk.f32.mxu0 %vm2451_vm0, %v2450_v0 }
 0x2ca   :  { %2156 = vmatprep.subr.mxu0 %v2450_v0 }
 0x2cb   :  { %2157 = vmatpush3.msra.mxu0 %v2489_v5 }
 0x2cc   :  { %2158 = vmatprep.subr.mxu0 %v2450_v0 }
 0x2cd   :  { %2159 = vmatpush3.msra.mxu0 %v2494_v6 }
 0x2ce   :  { %2160 = vmatprep.subr.mxu0 %v2450_v0 }
 0x2cf   :  { %2161 = vmatpush3.msra.mxu0 %v2499_v7 }
 0x2d0   :  { %2176 = vmatprep.subr.mxu0 %v2450_v0 }
 0x388   :  { %v308_v33 = vpop.f32.mrf.mxu0 }
 0x389   :  { %v313_v34 = vrot.slane %v308_v33, 4 }
 0x38a   :  { %v2142_v35 = vpop.f32.mrf.mxu0 }
 0x38b   :  { %v315_v36 = vadd.f32 %v313_v34, %v122_v11 }
 0x38d   :  { %2335 = vtanh.f32 %v315_v36  ;;  %v316_v38 = vmul.f32 0.5, %v315_v36 }
 0x38f   :  { %2337 = vtanh.f32 %v316_v38 }
 0x39a   :  { %v2336_v37 = vpop.eup %2335 }
 0x39b   :  { %326 = vrot.lane.b32.xlu0 %v2336_v37, %s2452_s24  ;;  %v132_v37 = vadd.f32 %v2529_v9, %v2562_v32 }
 0x39c   :  { %v2338_v39 = vpop.eup %2337 }
 0x39d   :  { %v318_v40 = vmul.f32 0.5, %v2338_v39 }
 0x39f   :  { %v319_v41 = vadd.f32 0.5, %v318_v40 }
 0x3a1   :  { %v324_v45 = vmul.f32 %v322_v44, %v319_v41 }
 0x40d   :  { %v327_v42 = vpop.permute.xlu0 %326 }
 0x40e   :  { %v329_v43 = vmul.f32 %v327_v42, %v319_v41 }
 0x410   :  { %331 = vrot.lane.b32.xlu1 %v329_v43, %s2453_s25 }
 0x482   :  { %v332_v46 = vpop.permute.xlu1 %331 }
 0x483   :  { %v334_v47 = vadd.f32 %v332_v46, %v324_v45 }
 0x485   :  { %2339 = vtanh.f32 %v334_v47  ;;  %v424_v1 = vrot.slane %v334_v47, 4 }
 0x492   :  { %v2340_v48 = vpop.eup %2339 }
 0x493   :  { %337 = vrot.lane.b32.xlu0 %v2340_v48, %s2452_s24 }
 0x505   :  { %v338_v49 = vpop.permute.xlu0 %337 }
 0x506   :  { %v2567_v50 = vmul.f32 %v338_v49, %v319_v41 }
 0x508   :  { %v342_v51 = vrot.slane %v2567_v50, 4 }
 0x50a   :  { %343 = vrot.lane.b32.xlu1 %v342_v51, %s2453_s25 }
 0x57c   :  { %v344_v52 = vpop.permute.xlu1 %343 }
 0x57d   :  { %2152 = vmatmul.mubr.msk.f32.vlgmr.msra.gmra.mxu1 %vm140_vm2, %v344_v52 }
 0x57e   :  { %2166 = vmatpush3.msra.mxu1 %v2480_v2  ;;  %2173 = vmatprep.mubr.msk.f32.mxu1 %vm2451_vm0, %v2450_v0 }
 0x57f   :  { %2167 = vmatprep.subr.mxu1 %v2450_v0 }
 0x580   :  { %2168 = vmatpush3.msra.mxu1 %v2489_v5 }
 0x581   :  { %2169 = vmatprep.subr.mxu1 %v2450_v0 }
 0x582   :  { %2170 = vmatpush3.msra.mxu1 %v2494_v6 }
 0x583   :  { %2171 = vmatprep.subr.mxu1 %v2450_v0 }
 0x584   :  { %2172 = vmatpush3.msra.mxu1 %v2499_v7 }
 0x585   :  { %2187 = vmatprep.subr.mxu1 %v2450_v0 }
 0x63d   :  { %v413_v54 = vpop.f32.mrf.mxu1 }
 0x63e   :  { %v417_v55 = vadd.f32 %v413_v54, %v127_v53 }
 0x63f   :  { %v2153_v56 = vpop.f32.mrf.mxu1 }
 0x640   :  { %2341 = vtanh.f32 %v417_v55  ;;  %v418_v58 = vmul.f32 0.5, %v417_v55 }
 0x642   :  { %2343 = vtanh.f32 %v418_v58 }
 0x64d   :  { %v2342_v57 = vpop.eup %2341 }
 0x64e   :  { %428 = vrot.lane.b32.xlu0 %v2342_v57, %s2452_s24 }
 0x64f   :  { %v2344_v59 = vpop.eup %2343 }
 0x650   :  { %v420_v60 = vmul.f32 0.5, %v2344_v59 }
 0x652   :  { %v421_v61 = vadd.f32 0.5, %v420_v60 }
 0x654   :  { %v426_v3 = vmul.f32 %v424_v1, %v421_v61 }
 0x6c0   :  { %v429_v62 = vpop.permute.xlu0 %428 }
 0x6c1   :  { %v431_v63 = vmul.f32 %v429_v62, %v421_v61 }
 0x6c3   :  { %433 = vrot.lane.b32.xlu1 %v431_v63, %s2453_s25 }
 0x735   :  { %v434_v4 = vpop.permute.xlu1 %433 }
 0x736   :  { %v436_v8 = vadd.f32 %v434_v4, %v426_v3 }
 0x738   :  { %2345 = vtanh.f32 %v436_v8  ;;  %v528_v25 = vrot.slane %v436_v8, 4 }
 0x745   :  { %v2346_v10 = vpop.eup %2345 }
 0x746   :  { %439 = vrot.lane.b32.xlu0 %v2346_v10, %s2452_s24 }
 0x7b8   :  { %v440_v11 = vpop.permute.xlu0 %439 }
 0x7b9   :  { %v2587_v12 = vmul.f32 %v440_v11, %v421_v61 }
 0x7bb   :  { %444 = vrot.lane.b32.xlu1 %v2587_v12, %s2453_s25 }
 0x82d   :  { %v445_v13 = vpop.permute.xlu1 %444 }
 0x82e   :  { %2163 = vmatmul.mubr.msk.f32.vlgmr.msra.gmra.mxu0 %vm140_vm2, %v445_v13 }
 0x82f   :  { %2177 = vmatpush3.msra.mxu0 %v2480_v2  ;;  %2184 = vmatprep.mubr.msk.f32.mxu0 %vm2451_vm0, %v2450_v0 }
 0x830   :  { %2178 = vmatprep.subr.mxu0 %v2450_v0 }
 0x831   :  { %2179 = vmatpush3.msra.mxu0 %v2489_v5 }
 0x832   :  { %2180 = vmatprep.subr.mxu0 %v2450_v0 }
 0x833   :  { %2181 = vmatpush3.msra.mxu0 %v2494_v6 }
 0x834   :  { %2182 = vmatprep.subr.mxu0 %v2450_v0 }
 0x835   :  { %2183 = vmatpush3.msra.mxu0 %v2499_v7 }
 0x836   :  { %2198 = vmatprep.subr.mxu0 %v2450_v0 }
 0x8ee   :  { %v514_v14 = vpop.f32.mrf.mxu0 }
 0x8ef   :  { %v519_v15 = vrot.slane %v514_v14, 4 }
 0x8f0   :  { %v2164_v16 = vpop.f32.mrf.mxu0 }
 0x8f1   :  { %v521_v17 = vadd.f32 %v519_v15, %v127_v53  ;;  %v2649_v15 = vadd.f32 %v2560_v31, %v2529_v9 }
 0x8f3   :  { %2347 = vtanh.f32 %v521_v17  ;;  %v522_v19 = vmul.f32 0.5, %v521_v17 }
 0x8f5   :  { %2349 = vtanh.f32 %v522_v19 }
 0x900   :  { %v2348_v18 = vpop.eup %2347 }
 0x901   :  { %532 = vrot.lane.b32.xlu0 %v2348_v18, %s2452_s24 }
 0x902   :  { %v2350_v20 = vpop.eup %2349 }
 0x903   :  { %v524_v21 = vmul.f32 0.5, %v2350_v20 }
 0x905   :  { %v525_v22 = vadd.f32 0.5, %v524_v21 }
 0x907   :  { %v530_v26 = vmul.f32 %v528_v25, %v525_v22 }
 0x973   :  { %v533_v23 = vpop.permute.xlu0 %532 }
 0x974   :  { %v535_v24 = vmul.f32 %v533_v23, %v525_v22 }
 0x976   :  { %537 = vrot.lane.b32.xlu1 %v535_v24, %s2453_s25 }
 0x9e8   :  { %v538_v27 = vpop.permute.xlu1 %537 }
 0x9e9   :  { %v540_v28 = vadd.f32 %v538_v27, %v530_v26 }
 0x9eb   :  { %2351 = vtanh.f32 %v540_v28  ;;  %v630_v48 = vrot.slane %v540_v28, 4  ;;  %v967_v28 = vld [vmem:[#allocation2 + $0x40] sm:$0xff] }
 0x9f8   :  { %v2352_v30 = vpop.eup %2351 }
 0x9f9   :  { %543 = vrot.lane.b32.xlu0 %v2352_v30, %s2452_s24  ;;  %v966_v30 = vld [vmem:[#allocation2 + $0x38] sm:$0xff] }
 0xa6b   :  { %v544_v33 = vpop.permute.xlu0 %543 }
 0xa6c   :  { %v2605_v34 = vmul.f32 %v544_v33, %v525_v22 }
 0xa6e   :  { %v548_v35 = vrot.slane %v2605_v34, 4 }
 0xa70   :  { %549 = vrot.lane.b32.xlu1 %v548_v35, %s2453_s25  ;;  %v960_v35 = vsel %vm959_vm3, %v2545_v29, %v2567_v50  ;;  %v961_v29 = vsel %vm959_vm3, %v2587_v12, %v2605_v34  ;;  %v2672_v50 = vld [vmem:[#allocation2 + $0x60] sm:$0xff]  ;;  %v2686_v34 = vld [vmem:[#allocation2 + $0x48] sm:$0xff] }
 0xae2   :  { %v550_v36 = vpop.permute.xlu1 %549 }
 0xae3   :  { %2174 = vmatmul.mubr.msk.f32.vlgmr.msra.gmra.mxu1 %vm140_vm2, %v550_v36  ;;  %v965_v36 = vld [vmem:[#allocation2 + $0x30] sm:$0xff] }
 0xae4   :  { %2188 = vmatpush3.msra.mxu1 %v2480_v2  ;;  %2195 = vmatprep.mubr.msk.f32.mxu1 %vm2451_vm0, %v2450_v0 }
 0xae5   :  { %2189 = vmatprep.subr.mxu1 %v2450_v0 }
 0xae6   :  { %2190 = vmatpush3.msra.mxu1 %v2489_v5 }
 0xae7   :  { %2191 = vmatprep.subr.mxu1 %v2450_v0 }
 0xae8   :  { %2192 = vmatpush3.msra.mxu1 %v2494_v6 }
 0xae9   :  { %2193 = vmatprep.subr.mxu1 %v2450_v0 }
 0xaea   :  { %2194 = vmatpush3.msra.mxu1 %v2499_v7 }
 0xaeb   :  { %2209 = vmatprep.subr.mxu1 %v967_v28 }
 0xba3   :  { %v619_v38 = vpop.f32.mrf.mxu1 }
 0xba4   :  { %v623_v39 = vadd.f32 %v619_v38, %v132_v37 }
 0xba5   :  { %v2175_v40 = vpop.f32.mrf.mxu1 }
 0xba6   :  { %2353 = vtanh.f32 %v623_v39  ;;  %v624_v42 = vmul.f32 0.5, %v623_v39 }
 0xba8   :  { %2355 = vtanh.f32 %v624_v42  ;;  %v2675_v42 = vld [vmem:[#allocation2 + $0x58] sm:$0xff] }
 0xbb3   :  { %v2354_v41 = vpop.eup %2353 }
 0xbb4   :  { %634 = vrot.lane.b32.xlu0 %v2354_v41, %s2452_s24 }
 0xbb5   :  { %v2356_v43 = vpop.eup %2355 }
 0xbb6   :  { %v626_v44 = vmul.f32 0.5, %v2356_v43  ;;  %v2681_v43 = vld [vmem:[#allocation2 + $0x50] sm:$0xff] }
 0xbb8   :  { %v627_v45 = vadd.f32 0.5, %v626_v44 }
 0xbba   :  { %v632_v49 = vmul.f32 %v630_v48, %v627_v45 }
 0xc26   :  { %v635_v46 = vpop.permute.xlu0 %634 }
 0xc27   :  { %v637_v47 = vmul.f32 %v635_v46, %v627_v45 }
 0xc29   :  { %639 = vrot.lane.b32.xlu1 %v637_v47, %s2453_s25 }
 0xc9b   :  { %v640_v51 = vpop.permute.xlu1 %639 }
 0xc9c   :  { %v642_v32 = vadd.f32 %v640_v51, %v632_v49  ;;  %v2717_v49 = vld [vmem:[%s2851_s2 + $0x1] ss:$0 sm:$0xff] }
 0xc9e   :  { %2357 = vtanh.f32 %v642_v32 }
 0xcab   :  { %v2358_v52 = vpop.eup %2357 }
 0xcac   :  { %645 = vrot.lane.b32.xlu0 %v2358_v52, %s2452_s24 }
 0xd1e   :  { %v646_v53 = vpop.permute.xlu0 %645 }
 0xd1f   :  { %v2624_v54 = vmul.f32 %v646_v53, %v627_v45 }
 0xd21   :  { %650 = vrot.lane.b32.xlu1 %v2624_v54, %s2453_s25 }
 0xd93   :  { %v651_v55 = vpop.permute.xlu1 %650 }
 0xd94   :  { %2185 = vmatmul.mubr.msk.f32.vlgmr.msra.gmra.mxu0 %vm140_vm2, %v651_v55 }
 0xd95   :  { %2199 = vmatpush3.msra.mxu0 %v2480_v2  ;;  %2206 = vmatprep.mubr.msk.f32.mxu0 %vm2451_vm0, %v2450_v0 }
 0xd96   :  { %2200 = vmatprep.subr.mxu0 %v2450_v0 }
 0xd97   :  { %2201 = vmatpush3.msra.mxu0 %v2489_v5 }
 0xd98   :  { %2202 = vmatprep.subr.mxu0 %v2450_v0 }
 0xd99   :  { %2203 = vmatpush3.msra.mxu0 %v2494_v6 }
 0xd9a   :  { %2204 = vmatprep.subr.mxu0 %v2450_v0 }
 0xd9b   :  { %2205 = vmatpush3.msra.mxu0 %v2499_v7  ;;  %v734_v7 = vrot.slane %v642_v32, 4 }
 0xd9c   :  { %2223 = vmatprep.subr.mxu0 %v2450_v0 }
 0xe54   :  { %v720_v56 = vpop.f32.mrf.mxu0 }
 0xe55   :  { %v725_v57 = vrot.slane %v720_v56, 4 }
 0xe56   :  { %v2186_v2 = vpop.f32.mrf.mxu0 }
 0xe57   :  { %v727_v58 = vadd.f32 %v725_v57, %v132_v37  ;;  %v964_v37 = vld [vmem:[#allocation2 + $0x28] sm:$0xff] }
 0xe59   :  { %2359 = vtanh.f32 %v727_v58  ;;  %v728_v60 = vmul.f32 0.5, %v727_v58 }
 0xe5b   :  { %2361 = vtanh.f32 %v728_v60 }
 0xe66   :  { %v2360_v59 = vpop.eup %2359 }
 0xe67   :  { %738 = vrot.lane.b32.xlu0 %v2360_v59, %s2452_s24 }
 0xe68   :  { %v2362_v5 = vpop.eup %2361 }
 0xe69   :  { %v730_v61 = vmul.f32 0.5, %v2362_v5 }
 0xe6b   :  { %v731_v62 = vadd.f32 0.5, %v730_v61 }
 0xe6d   :  { %v736_v1 = vmul.f32 %v734_v7, %v731_v62 }
 0xed9   :  { %v739_v6 = vpop.permute.xlu0 %738 }
 0xeda   :  { %v741_v63 = vmul.f32 %v739_v6, %v731_v62 }
 0xedc   :  { %743 = vrot.lane.b32.xlu1 %v741_v63, %s2453_s25 }
 0xf4e   :  { %v744_v3 = vpop.permute.xlu1 %743 }
 0xf4f   :  { %v746_v4 = vadd.f32 %v744_v3, %v736_v1 }
 0xf51   :  { %2363 = vtanh.f32 %v746_v4  ;;  %v836_v26 = vrot.slane %v746_v4, 4 }
 0xf5e   :  { %v2364_v8 = vpop.eup %2363 }
 0xf5f   :  { %749 = vrot.lane.b32.xlu0 %v2364_v8, %s2452_s24 }
 0xfd1   :  { %v750_v10 = vpop.permute.xlu0 %749 }
 0xfd2   :  { %v2642_v11 = vmul.f32 %v750_v10, %v731_v62 }
 0xfd4   :  { %v754_v13 = vrot.slane %v2642_v11, 4 }
 0xfd6   :  { %755 = vrot.lane.b32.xlu1 %v754_v13, %s2453_s25 }
0x1048   :  { %v756_v14 = vpop.permute.xlu1 %755 }
0x1049   :  { %2196 = vmatmul.mubr.msk.f32.vlgmr.msra.gmra.mxu1 %vm140_vm2, %v756_v14 }
0x104a   :  { %2210 = vmatpush3.msra.mxu1 %v967_v28 }
0x104b   :  { %2211 = vmatprep.subr.mxu1 %v966_v30 }
0x104c   :  { %2212 = vmatpush3.msra.mxu1 %v966_v30 }
0x104d   :  { %2213 = vmatprep.subr.mxu1 %v965_v36 }
0x104e   :  { %2214 = vmatpush3.msra.mxu1 %v965_v36 }
0x104f   :  { %2215 = vmatprep.subr.mxu1 %v964_v37 }
0x1050   :  { %2216 = vmatpush3.msra.mxu1 %v964_v37 }
0x1051   :  { %2234 = vmatprep.subr.mxu1 %v2450_v0 }
0x1109   :  { %v825_v16 = vpop.f32.mrf.mxu1 }
0x110a   :  { %v829_v17 = vadd.f32 %v825_v16, %v2649_v15 }
0x110b   :  { %v2197_v18 = vpop.f32.mrf.mxu1 }
0x110c   :  { %2365 = vtanh.f32 %v829_v17  ;;  %v830_v20 = vmul.f32 0.5, %v829_v17  ;;  %v962_v18 = vsel %vm959_vm3, %v2624_v54, %v2642_v11 }
0x110e   :  { %2367 = vtanh.f32 %v830_v20 }
0x1119   :  { %v2366_v19 = vpop.eup %2365 }
0x111a   :  { %840 = vrot.lane.b32.xlu0 %v2366_v19, %s2452_s24 }
0x111b   :  { %v2368_v21 = vpop.eup %2367 }
0x111c   :  { %v832_v22 = vmul.f32 0.5, %v2368_v21 }
0x111e   :  { %v833_v23 = vadd.f32 0.5, %v832_v22 }
0x1120   :  { %v838_v9 = vmul.f32 %v836_v26, %v833_v23 }
0x118c   :  { %v841_v24 = vpop.permute.xlu0 %840 }
0x118d   :  { %v843_v25 = vmul.f32 %v841_v24, %v833_v23 }
0x118f   :  { %845 = vrot.lane.b32.xlu1 %v843_v25, %s2453_s25 }
0x1201   :  { %v846_v31 = vpop.permute.xlu1 %845 }
0x1202   :  { %v2654_v27 = vadd.f32 %v846_v31, %v838_v9 }
0x1204   :  { %2369 = vtanh.f32 %v2654_v27  ;;  %v940_v4 = vrot.slane %v2654_v27, 4 }
0x1211   :  { %v2370_v33 = vpop.eup %2369 }
0x1212   :  { %851 = vrot.lane.b32.xlu0 %v2370_v33, %s2452_s24 }
0x1216   :  { %981 = vrot.lane.b32.xlu0 %v960_v35, %s2453_s25 }
0x1284   :  { %v852_v38 = vpop.permute.xlu0 %851 }
0x1285   :  { %v2663_v39 = vmul.f32 %v852_v38, %v833_v23 }
0x1287   :  { %856 = vrot.lane.b32.xlu1 %v2663_v39, %s2453_s25 }
0x1288   :  { %v982_v40 = vpop.permute.xlu0 %981 }
0x1289   :  { %2217 = vmatprep.mubr.msk.f32.mxu1 %vm140_vm2, %v982_v40 }
0x128b   :  { %983 = vrot.lane.b32.xlu1 %v961_v29, %s2453_s25 }
0x12f9   :  { %v857_v41 = vpop.permute.xlu1 %856 }
0x12fa   :  { %2207 = vmatmul.mubr.msk.f32.vlgmr.msra.gmra.mxu0 %vm140_vm2, %v857_v41 }
0x12fb   :  { %2224 = vmatpush3.msra.mxu0 %v2672_v50  ;;  %2231 = vmatprep.mubr.msk.f32.mxu0 %vm2451_vm0, %v2450_v0 }
0x12fc   :  { %2225 = vmatprep.subr.mxu0 %v2450_v0 }
0x12fd   :  { %2226 = vmatpush3.msra.mxu0 %v2675_v42  ;;  %v984_v12 = vpop.permute.xlu1 %983 }
0x12fe   :  { %2227 = vmatprep.subr.mxu0 %v2450_v0  ;;  %2218 = vmatmul.mubr.msk.f32.vlgmr.msra.gmra.mxu1 %vm140_vm2, %v984_v12 }
0x12ff   :  { %2228 = vmatpush3.msra.mxu0 %v2681_v43  ;;  %2235 = vmatpush3.msra.mxu1 %v2672_v50 }
0x1300   :  { %2229 = vmatprep.subr.mxu0 %v2450_v0  ;;  %2236 = vmatprep.subr.mxu1 %v2450_v0 }
0x1301   :  { %2230 = vmatpush3.msra.mxu0 %v2686_v34  ;;  %2237 = vmatpush3.msra.mxu1 %v2675_v42 }
0x1302   :  { %2232 = vmatmul.mubr.f32.vlgmr.msra.gmra.mxu0 %v2450_v0  ;;  %2238 = vmatprep.subr.mxu1 %v2450_v0 }
0x1303   :  { %2239 = vmatpush3.msra.mxu1 %v2681_v43  ;;  %2245 = vmatprep.subr.mxu0 %v2450_v0 }
0x1304   :  { %2240 = vmatprep.subr.mxu1 %v2450_v0  ;;  %2246 = vmatpush3.msra.mxu0 %v2672_v50 }
0x1305   :  { %2241 = vmatpush3.msra.mxu1 %v2686_v34  ;;  %2247 = vmatprep.subr.mxu0 %v2450_v0 }
0x1306   :  { %2248 = vmatpush3.msra.mxu0 %v2675_v42  ;;  %2253 = vmatprep.mubr.msk.f32.mxu0 %vm2451_vm0, %v2450_v0 }
0x1307   :  { %2249 = vmatprep.subr.mxu0 %v2450_v0  ;;  %2256 = vmatprep.subr.mxu1 %v2450_v0 }
0x1308   :  { %2250 = vmatpush3.msra.mxu0 %v2681_v43 }
0x1309   :  { %2251 = vmatprep.subr.mxu0 %v2450_v0 }
0x130a   :  { %2252 = vmatpush3.msra.mxu0 %v2686_v34 }
0x130b   :  { %2267 = vmatprep.subr.mxu0 %v2450_v0 }
0x13ba   :  { %v926_v44 = vpop.f32.mrf.mxu0 }
0x13bb   :  { %v931_v45 = vrot.slane %v926_v44, 4 }
0x13bc   :  { %v2208_v46 = vpop.f32.mrf.mxu0 }
0x13bd   :  { %v933_v47 = vadd.f32 %v931_v45, %v2649_v15 }
0x13be   :  { %v2712_v48 = vpop.f32.mrf.mxu1 }
0x13bf   :  { %2371 = vtanh.f32 %v933_v47  ;;  %v934_v2 = vmul.f32 0.5, %v933_v47 }
0x13c0   :  { %v1063_v51 = vpop.f32.mrf.mxu1 }
0x13c1   :  { %v2720_v32 = vadd.f32 %v2717_v49, %v1063_v51 }
0x13c2   :  { %v1148_v52 = vpop.f32.mrf.mxu0 }
0x13c3   :  { %v1152_v53 = vadd.f32 %v1148_v52, %v2720_v32  ;;  %v1069_v52 = vadd.f32 %v2712_v48, %v2717_v49 }
0x13c4   :  { %v2233_v55 = vpop.f32.mrf.mxu0 }
0x13c5   :  { %2373 = vtanh.f32 %v1152_v53  ;;  %v1153_v58 = vmul.f32 0.5, %v1152_v53 }
0x13c6   :  { %2375 = vtanh.f32 %v934_v2 }
0x13c7   :  { %2377 = vtanh.f32 %v1153_v58 }
0x13cc   :  { %v2372_v56 = vpop.eup %2371 }
0x13cd   :  { %944 = vrot.lane.b32.xlu0 %v2372_v56, %s2452_s24 }
0x13d2   :  { %v2374_v57 = vpop.eup %2373 }
0x13d3   :  { %1160 = vrot.lane.b32.xlu1 %v2374_v57, %s2452_s24  ;;  %v2376_v59 = vpop.eup %2375 }
0x13d4   :  { %v936_v60 = vmul.f32 0.5, %v2376_v59  ;;  %v2378_v5 = vpop.eup %2377 }
0x13d5   :  { %v1155_v63 = vmul.f32 0.5, %v2378_v5 }
0x13d6   :  { %v937_v61 = vadd.f32 0.5, %v936_v60 }
0x13d7   :  { %v1156_v7 = vadd.f32 0.5, %v1155_v63 }
0x13d8   :  { %v942_v8 = vmul.f32 %v940_v4, %v937_v61 }
0x13d9   :  { %v1158_v14 = vmul.f32 0.0, %v1156_v7 }
0x143f   :  { %v945_v62 = vpop.permute.xlu0 %944 }
0x1440   :  { %v947_v6 = vmul.f32 %v945_v62, %v937_v61 }
0x1442   :  { %949 = vrot.lane.b32.xlu0 %v947_v6, %s2453_s25 }
0x1445   :  { %v1161_v1 = vpop.permute.xlu1 %1160 }
0x1446   :  { %v1163_v3 = vmul.f32 %v1161_v1, %v1156_v7 }
0x1448   :  { %1165 = vrot.lane.b32.xlu1 %v1163_v3, %s2453_s25 }
0x14b4   :  { %v950_v10 = vpop.permute.xlu0 %949 }
0x14b5   :  { %v952_v13 = vadd.f32 %v950_v10, %v942_v8 }
0x14b7   :  { %2379 = vtanh.f32 %v952_v13 }
0x14ba   :  { %v1166_v15 = vpop.permute.xlu1 %1165 }
0x14bb   :  { %v1168_v16 = vadd.f32 %v1166_v15, %v1158_v14 }
0x14bd   :  { %2381 = vtanh.f32 %v1168_v16  ;;  %v1260_v29 = vrot.slane %v1168_v16, 4 }
0x14c4   :  { %v2380_v17 = vpop.eup %2379 }
0x14c5   :  { %955 = vrot.lane.b32.xlu0 %v2380_v17, %s2452_s24 }
0x14c9   :  { %985 = vrot.lane.b32.xlu0 %v962_v18, %s2453_s25 }
0x14ca   :  { %v2382_v19 = vpop.eup %2381 }
0x14cb   :  { %1171 = vrot.lane.b32.xlu1 %v2382_v19, %s2452_s24 }
0x1537   :  { %v956_v20 = vpop.permute.xlu0 %955 }
0x1538   :  { %v958_v21 = vmul.f32 %v956_v20, %v937_v61 }
0x153a   :  { %v963_v22 = vsel %vm959_vm3, %v2663_v39, %v958_v21 }
0x153b   :  { %v986_v23 = vpop.permute.xlu0 %985  ;;  %987 = vrot.lane.b32.xlu1 %v963_v22, %s2453_s25 }
0x153c   :  { %2220 = vmatprep.mubr.msk.f32.mxu1 %vm140_vm2, %v986_v23 }
0x153d   :  { %v1172_v24 = vpop.permute.xlu1 %1171 }
0x153e   :  { %v1174_v25 = vmul.f32 %v1172_v24, %v1156_v7 }
0x1540   :  { %1176 = vrot.lane.b32.xlu0 %v1174_v25, %s2453_s25 }
0x15ad   :  { %v988_v54 = vpop.permute.xlu1 %987 }
0x15ae   :  { %2221 = vmatmul.mubr.msk.f32.gmra.mxu1 %vm140_vm2, %v988_v54 }
0x15af   :  { %2242 = vmatprep.mubr.msk.f32.mxu1 %vm2451_vm0, %v2450_v0 }
0x15b2   :  { %v1177_v11 = vpop.permute.xlu0 %1176 }
0x15b3   :  { %2243 = vmatmul.mubr.msk.f32.vlgmr.msra.gmra.mxu1 %vm140_vm2, %v1177_v11 }
0x15b4   :  { %2257 = vmatpush3.msra.mxu1 %v2672_v50  ;;  %2264 = vmatprep.mubr.msk.f32.mxu1 %vm2451_vm0, %v2450_v0 }
0x15b5   :  { %2258 = vmatprep.subr.mxu1 %v2450_v0 }
0x15b6   :  { %2259 = vmatpush3.msra.mxu1 %v2675_v42 }
0x15b7   :  { %2260 = vmatprep.subr.mxu1 %v2450_v0 }
0x15b8   :  { %2261 = vmatpush3.msra.mxu1 %v2681_v43 }
0x15b9   :  { %2262 = vmatprep.subr.mxu1 %v2450_v0 }
0x15ba   :  { %2263 = vmatpush3.msra.mxu1 %v2686_v34 }
0x15bb   :  { %2278 = vmatprep.subr.mxu1 %v2450_v0 }
0x166e   :  { %v2753_v26 = vpop.f32.mrf.mxu1 }
0x1670   :  { %v2755_v9 = vpop.f32.mrf.mxu1 }
0x1673   :  { %v1246_v31 = vpop.f32.mrf.mxu1 }
0x1674   :  { %v1251_v27 = vrot.slane %v1246_v31, 4 }
0x1675   :  { %v2244_v28 = vpop.f32.mrf.mxu1 }
0x1676   :  { %v1253_v30 = vadd.f32 %v1251_v27, %v2720_v32 }
0x1678   :  { %2383 = vtanh.f32 %v1253_v30  ;;  %v1254_v35 = vmul.f32 0.5, %v1253_v30  ;;  %v1074_v30 = vadd.f32 %v2717_v49, %v2755_v9 }
0x167a   :  { %2385 = vtanh.f32 %v1254_v35 }
0x1685   :  { %v2384_v33 = vpop.eup %2383 }
0x1686   :  { %1264 = vrot.lane.b32.xlu1 %v2384_v33, %s2452_s24 }
0x1687   :  { %v2386_v36 = vpop.eup %2385 }
0x1688   :  { %v1256_v37 = vmul.f32 0.5, %v2386_v36 }
0x168a   :  { %v1257_v38 = vadd.f32 0.5, %v1256_v37 }
0x168c   :  { %v1262_v41 = vmul.f32 %v1260_v29, %v1257_v38 }
0x16f8   :  { %v1265_v39 = vpop.permute.xlu1 %1264 }
0x16f9   :  { %v1267_v40 = vmul.f32 %v1265_v39, %v1257_v38 }
0x16fb   :  { %1269 = vrot.lane.b32.xlu0 %v1267_v40, %s2453_s25 }
0x176d   :  { %v1270_v12 = vpop.permute.xlu0 %1269 }
0x176e   :  { %v1272_v44 = vadd.f32 %v1270_v12, %v1262_v41 }
0x1770   :  { %2387 = vtanh.f32 %v1272_v44  ;;  %v1362_v62 = vrot.slane %v1272_v44, 4 }
0x177d   :  { %v2388_v45 = vpop.eup %2387 }
0x177e   :  { %1275 = vrot.lane.b32.xlu1 %v2388_v45, %s2452_s24 }
0x17f0   :  { %v1276_v46 = vpop.permute.xlu1 %1275 }
0x17f1   :  { %v1278_v47 = vmul.f32 %v1276_v46, %v1257_v38 }
0x17f3   :  { %v1280_v51 = vrot.slane %v1278_v47, 4 }
0x17f5   :  { %1281 = vrot.lane.b32.xlu0 %v1280_v51, %s2453_s25 }
0x1867   :  { %v1282_v32 = vpop.permute.xlu0 %1281 }
0x1868   :  { %2254 = vmatmul.mubr.msk.f32.vlgmr.msra.gmra.mxu0 %vm140_vm2, %v1282_v32 }
0x1869   :  { %2268 = vmatpush3.msra.mxu0 %v2672_v50  ;;  %2275 = vmatprep.mubr.msk.f32.mxu0 %vm2451_vm0, %v2450_v0 }
0x186a   :  { %2269 = vmatprep.subr.mxu0 %v2450_v0 }
0x186b   :  { %2270 = vmatpush3.msra.mxu0 %v2675_v42 }
0x186c   :  { %2271 = vmatprep.subr.mxu0 %v2450_v0 }
0x186d   :  { %2272 = vmatpush3.msra.mxu0 %v2681_v43 }
0x186e   :  { %2273 = vmatprep.subr.mxu0 %v2450_v0 }
0x186f   :  { %2274 = vmatpush3.msra.mxu0 %v2686_v34 }
0x1870   :  { %2289 = vmatprep.subr.mxu0 %v2450_v0 }
0x1928   :  { %v1351_v53 = vpop.f32.mrf.mxu0 }
0x1929   :  { %v1355_v55 = vadd.f32 %v1351_v53, %v1069_v52 }
0x192a   :  { %v2255_v56 = vpop.f32.mrf.mxu0 }
0x192b   :  { %2389 = vtanh.f32 %v1355_v55  ;;  %v1356_v2 = vmul.f32 0.5, %v1355_v55 }
0x192d   :  { %2391 = vtanh.f32 %v1356_v2 }
0x1938   :  { %v2390_v57 = vpop.eup %2389 }
0x1939   :  { %1366 = vrot.lane.b32.xlu1 %v2390_v57, %s2452_s24 }
0x193a   :  { %v2392_v58 = vpop.eup %2391 }
0x193b   :  { %v1358_v59 = vmul.f32 0.5, %v2392_v58 }
0x193d   :  { %v1359_v60 = vadd.f32 0.5, %v1358_v59 }
0x193f   :  { %v1364_v6 = vmul.f32 %v1362_v62, %v1359_v60 }
0x19ab   :  { %v1367_v5 = vpop.permute.xlu1 %1366 }
0x19ac   :  { %v1369_v61 = vmul.f32 %v1367_v5, %v1359_v60 }
0x19ae   :  { %1371 = vrot.lane.b32.xlu0 %v1369_v61, %s2453_s25 }
0x1a20   :  { %v1372_v63 = vpop.permute.xlu0 %1371 }
0x1a21   :  { %v1374_v48 = vadd.f32 %v1372_v63, %v1364_v6 }
0x1a23   :  { %2393 = vtanh.f32 %v1374_v48  ;;  %v1466_v22 = vrot.slane %v1374_v48, 4 }
0x1a30   :  { %v2394_v7 = vpop.eup %2393 }
0x1a31   :  { %1377 = vrot.lane.b32.xlu1 %v2394_v7, %s2452_s24 }
0x1aa3   :  { %v1378_v1 = vpop.permute.xlu1 %1377 }
0x1aa4   :  { %v1380_v3 = vmul.f32 %v1378_v1, %v1359_v60 }
0x1aa6   :  { %1382 = vrot.lane.b32.xlu0 %v1380_v3, %s2453_s25  ;;  %v1079_v3 = vadd.f32 %v2753_v26, %v2717_v49 }
0x1b18   :  { %v1383_v4 = vpop.permute.xlu0 %1382 }
0x1b19   :  { %2265 = vmatmul.mubr.msk.f32.vlgmr.msra.gmra.mxu1 %vm140_vm2, %v1383_v4 }
0x1b1a   :  { %2279 = vmatpush3.msra.mxu1 %v2672_v50  ;;  %2286 = vmatprep.mubr.msk.f32.mxu1 %vm2451_vm0, %v2450_v0 }
0x1b1b   :  { %2280 = vmatprep.subr.mxu1 %v2450_v0 }
0x1b1c   :  { %2281 = vmatpush3.msra.mxu1 %v2675_v42 }
0x1b1d   :  { %2282 = vmatprep.subr.mxu1 %v2450_v0 }
0x1b1e   :  { %2283 = vmatpush3.msra.mxu1 %v2681_v43 }
0x1b1f   :  { %2284 = vmatprep.subr.mxu1 %v2450_v0 }
0x1b20   :  { %2285 = vmatpush3.msra.mxu1 %v2686_v34 }
0x1b21   :  { %2300 = vmatprep.subr.mxu1 %v2450_v0 }
0x1bd9   :  { %v1452_v8 = vpop.f32.mrf.mxu1 }
0x1bda   :  { %v1457_v10 = vrot.slane %v1452_v8, 4 }
0x1bdb   :  { %v2266_v13 = vpop.f32.mrf.mxu1 }
0x1bdc   :  { %v1459_v14 = vadd.f32 %v1457_v10, %v1069_v52 }
0x1bde   :  { %2395 = vtanh.f32 %v1459_v14  ;;  %v1460_v16 = vmul.f32 0.5, %v1459_v14 }
0x1be0   :  { %2397 = vtanh.f32 %v1460_v16 }
0x1beb   :  { %v2396_v15 = vpop.eup %2395 }
0x1bec   :  { %1470 = vrot.lane.b32.xlu1 %v2396_v15, %s2452_s24 }
0x1bed   :  { %v2398_v17 = vpop.eup %2397 }
0x1bee   :  { %v1462_v18 = vmul.f32 0.5, %v2398_v17 }
0x1bf0   :  { %v1463_v19 = vadd.f32 0.5, %v1462_v18 }
0x1bf2   :  { %v1468_v23 = vmul.f32 %v1466_v22, %v1463_v19 }
0x1c5e   :  { %v1471_v20 = vpop.permute.xlu1 %1470 }
0x1c5f   :  { %v1473_v21 = vmul.f32 %v1471_v20, %v1463_v19 }
0x1c61   :  { %1475 = vrot.lane.b32.xlu0 %v1473_v21, %s2453_s25 }
0x1cd3   :  { %v1476_v24 = vpop.permute.xlu0 %1475 }
0x1cd4   :  { %v1478_v25 = vadd.f32 %v1476_v24, %v1468_v23 }
0x1cd6   :  { %2399 = vtanh.f32 %v1478_v25  ;;  %v1568_v44 = vrot.slane %v1478_v25, 4 }
0x1ce3   :  { %v2400_v54 = vpop.eup %2399 }
0x1ce4   :  { %1481 = vrot.lane.b32.xlu1 %v2400_v54, %s2452_s24 }
0x1d56   :  { %v1482_v11 = vpop.permute.xlu1 %1481 }
0x1d57   :  { %v1484_v31 = vmul.f32 %v1482_v11, %v1463_v19 }
0x1d59   :  { %v1486_v27 = vrot.slane %v1484_v31, 4 }
0x1d5b   :  { %1487 = vrot.lane.b32.xlu0 %v1486_v27, %s2453_s25 }
0x1dcd   :  { %v1488_v28 = vpop.permute.xlu0 %1487 }
0x1dce   :  { %2276 = vmatmul.mubr.msk.f32.vlgmr.msra.gmra.mxu0 %vm140_vm2, %v1488_v28 }
0x1dcf   :  { %2290 = vmatpush3.msra.mxu0 %v2672_v50  ;;  %2297 = vmatprep.mubr.msk.f32.mxu0 %vm2451_vm0, %v2450_v0 }
0x1dd0   :  { %2291 = vmatprep.subr.mxu0 %v2450_v0 }
0x1dd1   :  { %2292 = vmatpush3.msra.mxu0 %v2675_v42 }
0x1dd2   :  { %2293 = vmatprep.subr.mxu0 %v2450_v0 }
0x1dd3   :  { %2294 = vmatpush3.msra.mxu0 %v2681_v43 }
0x1dd4   :  { %2295 = vmatprep.subr.mxu0 %v2450_v0 }
0x1dd5   :  { %2296 = vmatpush3.msra.mxu0 %v2686_v34 }
0x1dd6   :  { %2311 = vmatprep.subr.mxu0 %v2450_v0 }
0x1e8e   :  { %v1557_v33 = vpop.f32.mrf.mxu0 }
0x1e8f   :  { %v1561_v35 = vadd.f32 %v1557_v33, %v1074_v30 }
0x1e90   :  { %v2277_v36 = vpop.f32.mrf.mxu0 }
0x1e91   :  { %2401 = vtanh.f32 %v1561_v35  ;;  %v1562_v38 = vmul.f32 0.5, %v1561_v35 }
0x1e93   :  { %2403 = vtanh.f32 %v1562_v38 }
0x1e9e   :  { %v2402_v37 = vpop.eup %2401 }
0x1e9f   :  { %1572 = vrot.lane.b32.xlu1 %v2402_v37, %s2452_s24 }
0x1ea0   :  { %v2404_v39 = vpop.eup %2403 }
0x1ea1   :  { %v1564_v40 = vmul.f32 0.5, %v2404_v39 }
0x1ea3   :  { %v1565_v29 = vadd.f32 0.5, %v1564_v40 }
0x1ea5   :  { %v1570_v45 = vmul.f32 %v1568_v44, %v1565_v29  ;;  %v1899_v44 = vld [vmem:[#allocation2 + $0x78] sm:$0xff] }
0x1f11   :  { %v1573_v41 = vpop.permute.xlu1 %1572 }
0x1f12   :  { %v1575_v12 = vmul.f32 %v1573_v41, %v1565_v29 }
0x1f14   :  { %1577 = vrot.lane.b32.xlu0 %v1575_v12, %s2453_s25  ;;  %v1900_v12 = vld [vmem:[#allocation2 + $0x80] sm:$0xff] }
0x1f86   :  { %v1578_v46 = vpop.permute.xlu0 %1577 }
0x1f87   :  { %v1580_v9 = vadd.f32 %v1578_v46, %v1570_v45  ;;  %v1898_v45 = vld [vmem:[#allocation2 + $0x70] sm:$0xff]  ;;  %v1897_v46 = vld [vmem:[#allocation2 + $0x68] sm:$0xff] }
0x1f89   :  { %2405 = vtanh.f32 %v1580_v9 }
0x1f96   :  { %v2406_v47 = vpop.eup %2405 }
0x1f97   :  { %1583 = vrot.lane.b32.xlu1 %v2406_v47, %s2452_s24 }
0x2009   :  { %v1584_v51 = vpop.permute.xlu1 %1583 }
0x200a   :  { %v1586_v32 = vmul.f32 %v1584_v51, %v1565_v29 }
0x200c   :  { %1588 = vrot.lane.b32.xlu0 %v1586_v32, %s2453_s25 }
0x207e   :  { %v1589_v52 = vpop.permute.xlu0 %1588 }
0x207f   :  { %2287 = vmatmul.mubr.msk.f32.vlgmr.msra.gmra.mxu1 %vm140_vm2, %v1589_v52 }
0x2080   :  { %2301 = vmatpush3.msra.mxu1 %v2672_v50  ;;  %2308 = vmatprep.mubr.msk.f32.mxu1 %vm2451_vm0, %v2450_v0 }
0x2081   :  { %2302 = vmatprep.subr.mxu1 %v2450_v0 }
0x2082   :  { %2303 = vmatpush3.msra.mxu1 %v2675_v42 }
0x2083   :  { %2304 = vmatprep.subr.mxu1 %v2450_v0 }
0x2084   :  { %2305 = vmatpush3.msra.mxu1 %v2681_v43  ;;  %v1672_v43 = vrot.slane %v1580_v9, 4 }
0x2085   :  { %2306 = vmatprep.subr.mxu1 %v2450_v0 }
0x2086   :  { %2307 = vmatpush3.msra.mxu1 %v2686_v34 }
0x213f   :  { %v1658_v53 = vpop.f32.mrf.mxu1 }
0x2140   :  { %v1663_v55 = vrot.slane %v1658_v53, 4  ;;  %v2013_v53 = vld [vmem:[%s2851_s2 + $0x2] ss:$0 sm:$0xff] }
0x2141   :  { %v2288_v56 = vpop.f32.mrf.mxu1 }
0x2142   :  { %v1665_v57 = vadd.f32 %v1663_v55, %v1074_v30 }
0x2144   :  { %2407 = vtanh.f32 %v1665_v57  ;;  %v1666_v2 = vmul.f32 0.5, %v1665_v57 }
0x2146   :  { %2409 = vtanh.f32 %v1666_v2 }
0x2151   :  { %v2408_v50 = vpop.eup %2407 }
0x2152   :  { %1676 = vrot.lane.b32.xlu1 %v2408_v50, %s2452_s24 }
0x2153   :  { %v2410_v58 = vpop.eup %2409 }
0x2154   :  { %v1668_v42 = vmul.f32 0.5, %v2410_v58 }
0x2156   :  { %v1669_v59 = vadd.f32 0.5, %v1668_v42 }
0x2158   :  { %v1674_v61 = vmul.f32 %v1672_v43, %v1669_v59 }
0x21c4   :  { %v1677_v60 = vpop.permute.xlu1 %1676 }
0x21c5   :  { %v1679_v5 = vmul.f32 %v1677_v60, %v1669_v59 }
0x21c7   :  { %1681 = vrot.lane.b32.xlu0 %v1679_v5, %s2453_s25 }
0x2239   :  { %v1682_v34 = vpop.permute.xlu0 %1681 }
0x223a   :  { %v1684_v62 = vadd.f32 %v1682_v34, %v1674_v61 }
0x223c   :  { %2411 = vtanh.f32 %v1684_v62  ;;  %v1774_v20 = vrot.slane %v1684_v62, 4 }
0x2249   :  { %v2412_v6 = vpop.eup %2411 }
0x224a   :  { %1687 = vrot.lane.b32.xlu1 %v2412_v6, %s2452_s24 }
0x22bc   :  { %v1688_v63 = vpop.permute.xlu1 %1687 }
0x22bd   :  { %v1690_v48 = vmul.f32 %v1688_v63, %v1669_v59 }
0x22bf   :  { %v1692_v7 = vrot.slane %v1690_v48, 4 }
0x22c1   :  { %1693 = vrot.lane.b32.xlu0 %v1692_v7, %s2453_s25 }
0x2333   :  { %v1694_v1 = vpop.permute.xlu0 %1693 }
0x2334   :  { %2298 = vmatmul.mubr.msk.f32.vlgmr.msra.gmra.mxu0 %vm140_vm2, %v1694_v1 }
0x2335   :  { %2319 = vmatprep.mubr.msk.f32.mxu0 %vm2451_vm0, %v2450_v0  ;;  %2312 = vmatpush3.msra.mxu0 %v1900_v12 }
0x2336   :  { %2313 = vmatprep.subr.mxu0 %v2450_v0 }
0x2337   :  { %2314 = vmatpush3.msra.mxu0 %v1899_v44 }
0x2338   :  { %2315 = vmatprep.subr.mxu0 %v2450_v0 }
0x2339   :  { %2316 = vmatpush3.msra.mxu0 %v1898_v45 }
0x233a   :  { %2317 = vmatprep.subr.mxu0 %v2450_v0 }
0x233b   :  { %2318 = vmatpush3.msra.mxu0 %v1897_v46 }
0x23f4   :  { %v1763_v4 = vpop.f32.mrf.mxu0 }
0x23f5   :  { %v1767_v8 = vadd.f32 %v1763_v4, %v1079_v3 }
0x23f6   :  { %v2299_v10 = vpop.f32.mrf.mxu0 }
0x23f7   :  { %2413 = vtanh.f32 %v1767_v8  ;;  %v1768_v14 = vmul.f32 0.5, %v1767_v8 }
0x23f9   :  { %2415 = vtanh.f32 %v1768_v14 }
0x2404   :  { %v2414_v13 = vpop.eup %2413 }
0x2405   :  { %1778 = vrot.lane.b32.xlu1 %v2414_v13, %s2452_s24 }
0x2406   :  { %v2416_v15 = vpop.eup %2415 }
0x2407   :  { %v1770_v16 = vmul.f32 0.5, %v2416_v15 }
0x2409   :  { %v1771_v17 = vadd.f32 0.5, %v1770_v16 }
0x240b   :  { %v1776_v21 = vmul.f32 %v1774_v20, %v1771_v17 }
0x2477   :  { %v1779_v18 = vpop.permute.xlu1 %1778 }
0x2478   :  { %v1781_v19 = vmul.f32 %v1779_v18, %v1771_v17 }
0x247a   :  { %1783 = vrot.lane.b32.xlu0 %v1781_v19, %s2453_s25 }
0x24ec   :  { %v1784_v22 = vpop.permute.xlu0 %1783 }
0x24ed   :  { %v1786_v49 = vadd.f32 %v1784_v22, %v1776_v21 }
0x24ef   :  { %2417 = vtanh.f32 %v1786_v49  ;;  %v1878_v39 = vrot.slane %v1786_v49, 4 }
0x24fc   :  { %v2418_v26 = vpop.eup %2417 }
0x24fd   :  { %1789 = vrot.lane.b32.xlu1 %v2418_v26, %s2452_s24 }
0x256f   :  { %v1790_v23 = vpop.permute.xlu1 %1789 }
0x2570   :  { %v1792_v24 = vmul.f32 %v1790_v23, %v1771_v17 }
0x2572   :  { %1794 = vrot.lane.b32.xlu0 %v1792_v24, %s2453_s25 }
0x25e4   :  { %v1795_v25 = vpop.permute.xlu0 %1794 }
0x25e5   :  { %2309 = vmatmul.mubr.msk.f32.vlgmr.msra.gmra.mxu1 %vm140_vm2, %v1795_v25 }
0x26a5   :  { %v1864_v54 = vpop.f32.mrf.mxu1 }
0x26a6   :  { %v1869_v11 = vrot.slane %v1864_v54, 4 }
0x26a7   :  { %v2310_v31 = vpop.f32.mrf.mxu1 }
0x26a8   :  { %v1871_v27 = vadd.f32 %v1869_v11, %v1079_v3 }
0x26aa   :  { %2419 = vtanh.f32 %v1871_v27  ;;  %v1872_v30 = vmul.f32 0.5, %v1871_v27 }
0x26ac   :  { %2421 = vtanh.f32 %v1872_v30 }
0x26b7   :  { %v2420_v28 = vpop.eup %2419 }
0x26b8   :  { %1882 = vrot.lane.b32.xlu1 %v2420_v28, %s2452_s24 }
0x26b9   :  { %v2422_v33 = vpop.eup %2421 }
0x26ba   :  { %v1874_v35 = vmul.f32 0.5, %v2422_v33 }
0x26bc   :  { %v1875_v36 = vadd.f32 0.5, %v1874_v35 }
0x26be   :  { %v1880_v40 = vmul.f32 %v1878_v39, %v1875_v36 }
0x272a   :  { %v1883_v37 = vpop.permute.xlu1 %1882 }
0x272b   :  { %v1885_v38 = vmul.f32 %v1883_v37, %v1875_v36 }
0x272d   :  { %1887 = vrot.lane.b32.xlu0 %v1885_v38, %s2453_s25 }
0x279f   :  { %v1888_v29 = vpop.permute.xlu0 %1887 }
0x27a0   :  { %v1890_v41 = vadd.f32 %v1888_v29, %v1880_v40 }
0x27a2   :  { %2423 = vtanh.f32 %v1890_v41 }
0x27af   :  { %v2424_v9 = vpop.eup %2423 }
0x27b0   :  { %1893 = vrot.lane.b32.xlu1 %v2424_v9, %s2452_s24 }
0x2822   :  { %v1894_v47 = vpop.permute.xlu1 %1893 }
0x2823   :  { %v1896_v51 = vmul.f32 %v1894_v47, %v1875_v36 }
0x2825   :  { %v1907_v32 = vrot.slane %v1896_v51, 4 }
0x2827   :  { %1908 = vrot.lane.b32.xlu0 %v1907_v32, %s2453_s25 }
0x2899   :  { %v1909_v52 = vpop.permute.xlu0 %1908 }
0x289a   :  { %2320 = vmatmul.mubr.msk.f32.vlgmr.msra.gmra.mxu0 %vm140_vm2, %v1909_v52 }
0x295a   :  { %v1978_v55 = vpop.f32.mrf.mxu0 }
0x295b   :  { %v1979_v56 = vadd.f32 %v2013_v53, %v1978_v55 }
0x295c   :  { %v2321_v0 = vpop.f32.mrf.mxu0 }
0x295d   :  { %1983 = vst.msk [vmem:[%s2852_s3] sm:$0xf] %vm1982_vm4, %v1979_v56 }
0x295e   :  { %1988 = vsyncpa [#allocation3], 1 }

</bundles_post_ra>
